<compile_context>
chip_gen: v6e
topology: v6e:2x2x1
jax: 0.10.0
libtpu: 0.0.40
codegen_flags: <defaults>
</compile_context>

<pallas_src>
import numpy as np
import jax
import jax.numpy as jnp
from jax.experimental import pallas as pl
from jax.experimental.pallas import tpu as pltpu


def _round_up(x, m):
    return (x + m - 1) // m * m


def _bilstm_kernel(gf_ref, gb_ref, len_ref, whhf_ref, whhb_ref,
                   outf_ref, outb_ref,
                   hf_ref, cf_ref, hb_ref, cb_ref):
    """Fused bidirectional LSTM recurrence over one time chunk per direction.

    Grid step c processes forward chunk c and backward chunk (Nc-1-c), so both
    directions stream their chunks monotonically while sharing one grid.

    gf_ref/gb_ref : (Tc*B, 4Hp) bf16  pre-computed gate pre-activations
                                      (x @ W_ih + b_ih + b_hh), time-major
    len_ref       : (B, 1)  int32     per-sequence valid lengths
    whh*_ref      : (Hp, 4Hp) bf16    recurrent weights, per-gate lane-padded
    out*_ref      : (Tc*B, Hp) bf16   forward / backward hidden outputs
    h*/c*_ref     : (B, Hp)  f32      recurrent state (persists across chunks)
    """
    B = len_ref.shape[0]
    Hp = hf_ref.shape[1]
    Tc = outf_ref.shape[0] // B
    n_chunks = pl.num_programs(0)
    c_idx = pl.program_id(0)

    @pl.when(c_idx == 0)
    def _():
        hf_ref[...] = jnp.zeros_like(hf_ref)
        cf_ref[...] = jnp.zeros_like(cf_ref)
        hb_ref[...] = jnp.zeros_like(hb_ref)
        cb_ref[...] = jnp.zeros_like(cb_ref)

    lengths = len_ref[...]  # (B, 1) int32

    # SSA state carry: one load per chunk, one writeback per chunk.
    hf = hf_ref[...]
    cf = cf_ref[...]
    hb = hb_ref[...]
    cb = cb_ref[...]

    def cell(g_pre_bf16, h, c_state, whh_ref):
        g = g_pre_bf16.astype(jnp.float32) + jnp.dot(
            h.astype(jnp.bfloat16), whh_ref[...],
            preferred_element_type=jnp.float32)
        i = jax.nn.sigmoid(g[:, 0:Hp])              # lane-aligned slices
        f = jax.nn.sigmoid(g[:, Hp:2 * Hp])
        gg = jnp.tanh(g[:, 2 * Hp:3 * Hp])
        o = jax.nn.sigmoid(g[:, 3 * Hp:4 * Hp])
        c_new = f * c_state + i * gg
        h_new = o * jnp.tanh(c_new)
        return h_new, c_new

    # Fused fwd/bwd recurrence, fully unrolled (Tc is small & static); one
    # basic block so the scheduler interleaves both directions' MXU/EUP/VPU.
    for s in range(Tc):
        tf_l = s                 # forward local time within chunk c
        tb_l = Tc - 1 - s        # backward local time within chunk Nc-1-c
        tf_g = c_idx * Tc + tf_l
        tb_g = (n_chunks - 1 - c_idx) * Tc + tb_l

        # forward direction
        hf_new, cf_new = cell(gf_ref[tf_l * B:(tf_l + 1) * B, :],
                              hf, cf, whhf_ref)
        mf = lengths > tf_g
        hf = jnp.where(mf, hf_new, hf)
        cf = jnp.where(mf, cf_new, cf)
        outf_ref[tf_l * B:(tf_l + 1) * B, :] = (
            jnp.where(mf, hf_new, 0.0).astype(outf_ref.dtype))

        # backward direction: state pinned to zero while t >= len so each
        # sequence's backward pass starts from zero at its true last element
        # (packed-sequence semantics). Backward global time runs Tp-1 -> 0.
        hb_new, cb_new = cell(gb_ref[tb_l * B:(tb_l + 1) * B, :],
                              hb, cb, whhb_ref)
        mb = lengths > tb_g
        hb = jnp.where(mb, hb_new, 0.0)
        cb = jnp.where(mb, cb_new, 0.0)
        outb_ref[tb_l * B:(tb_l + 1) * B, :] = (
            jnp.where(mb, hb_new, 0.0).astype(outb_ref.dtype))

    hf_ref[...] = hf
    cf_ref[...] = cf
    hb_ref[...] = hb
    cb_ref[...] = cb


def _prep_w(w, H, Hp):
    """PyTorch (4H, H) weight -> (Hp, 4Hp) bf16, per-gate lane-padded, x@W form."""
    wt = jnp.transpose(w).reshape(H, 4, H)                    # (in, gate, out)
    wt = jnp.pad(wt, ((0, Hp - H), (0, 0), (0, Hp - H)))
    return wt.reshape(Hp, 4 * Hp).astype(jnp.bfloat16)


def _prep_b(b_ih, b_hh, H, Hp):
    b = (b_ih + b_hh).reshape(4, H)
    b = jnp.pad(b, ((0, 0), (0, Hp - H)))
    return b.reshape(1, 4 * Hp).astype(jnp.float32)


def bilstm_packed_forward(x_bt, seq_lengths, params, time_chunk=8):
    """Equivalent of LSTMModel.forward: returns PackedSequence.data (N, 2H)."""
    B, T, H = x_bt.shape
    lens_list = [int(l) for l in seq_lengths]
    assert all(lens_list[i] >= lens_list[i + 1]
               for i in range(len(lens_list) - 1)), \
        "seq_lengths must be sorted descending (pack_padded_sequence default)"
    assert max(lens_list) <= T

    Hp = _round_up(H, 128)
    Bp = _round_up(B, 8)
    Tc = min(time_chunk, T)
    Tp = _round_up(T, Tc)
    Nc = Tp // Tc
    chunk_rows = Tc * Bp

    # host-side static packing indices (PackedSequence row order: t-major, b)
    idx_list = []
    for t in range(T):
        bs = sum(1 for l in lens_list if l > t)               # batch_sizes[t]
        if bs > 0:
            idx_list.append(t * Bp + np.arange(bs, dtype=np.int32))
    idx = jnp.asarray(np.concatenate(idx_list))

    lens_np = np.zeros((Bp, 1), np.int32)
    lens_np[:B, 0] = np.asarray(lens_list, np.int32)
    lens = jnp.asarray(lens_np)

    wihf = _prep_w(params["w_ih_f"], H, Hp)
    whhf = _prep_w(params["w_hh_f"], H, Hp)
    bf = _prep_b(params["b_ih_f"], params["b_hh_f"], H, Hp)
    wihb = _prep_w(params["w_ih_b"], H, Hp)
    whhb = _prep_w(params["w_hh_b"], H, Hp)
    bb = _prep_b(params["b_ih_b"], params["b_hh_b"], H, Hp)

    # VMEM budget: gate chunks + output chunks (double-buffered, bf16),
    # W_hh (double-buffered, bf16), f32 state scratch; 50% headroom,
    # clamped to [32 MiB, 64 MiB] (64 MiB = v7x physical VMEM per TC).
    budget = (2 * 2 * chunk_rows * 4 * Hp * 2
              + 2 * 2 * chunk_rows * Hp * 2
              + 2 * 2 * Hp * 4 * Hp * 2
              + 4 * Bp * Hp * 4
              + 2 * Bp * 128 * 4)
    vmem_limit = int(min(64 * 1024 * 1024,
                         max(32 * 1024 * 1024, budget * 3 // 2)))

    @jax.jit
    def run(x_in, lens_arr, idx_arr, wihf, bf, whhf, wihb, bb, whhb):
        # fused prep: transpose -> pad -> bf16 cast -> flatten (time-major)
        x_tm = jnp.transpose(x_in.astype(jnp.float32), (1, 0, 2))   # (T,B,H)
        x_p = jnp.pad(x_tm, ((0, Tp - T), (0, Bp - B), (0, Hp - H)))
        x_flat = x_p.astype(jnp.bfloat16).reshape(Tp * Bp, Hp)

        # Hoisted input projection: one MXU-throughput-bound matmul per
        # direction (full M = Tp*Bp), bias folded in, streamed as bf16.
        gates_f = (jnp.dot(x_flat, wihf, preferred_element_type=jnp.float32)
                   + bf).astype(jnp.bfloat16)
        gates_b = (jnp.dot(x_flat, wihb, preferred_element_type=jnp.float32)
                   + bb).astype(jnp.bfloat16)

        out_f, out_b = pl.pallas_call(
            _bilstm_kernel,
            out_shape=(jax.ShapeDtypeStruct((Tp * Bp, Hp), jnp.bfloat16),
                       jax.ShapeDtypeStruct((Tp * Bp, Hp), jnp.bfloat16)),
            grid=(Nc,),
            in_specs=[
                pl.BlockSpec((chunk_rows, 4 * Hp), lambda c: (c, 0)),          # gates fwd
                pl.BlockSpec((chunk_rows, 4 * Hp), lambda c: (Nc - 1 - c, 0)), # gates bwd
                pl.BlockSpec((Bp, 1), lambda c: (0, 0)),                       # lengths
                pl.BlockSpec((Hp, 4 * Hp), lambda c: (0, 0)),                  # W_hh f
                pl.BlockSpec((Hp, 4 * Hp), lambda c: (0, 0)),                  # W_hh b
            ],
            out_specs=(pl.BlockSpec((chunk_rows, Hp), lambda c: (c, 0)),
                       pl.BlockSpec((chunk_rows, Hp), lambda c: (Nc - 1 - c, 0))),
            scratch_shapes=[
                pltpu.VMEM((Bp, Hp), jnp.float32),              # h fwd
                pltpu.VMEM((Bp, Hp), jnp.float32),              # c fwd
                pltpu.VMEM((Bp, Hp), jnp.float32),              # h bwd
                pltpu.VMEM((Bp, Hp), jnp.float32),              # c bwd
            ],
            compiler_params=pltpu.CompilerParams(
                dimension_semantics=("arbitrary",),
                vmem_limit_bytes=vmem_limit),
        )(gates_f, gates_b, lens_arr, whhf, whhb)

        # single-gather packing; final result in f32 like the PyTorch module
        packed_f = jnp.take(out_f, idx_arr, axis=0)[:, :H].astype(jnp.float32)
        packed_b = jnp.take(out_b, idx_arr, axis=0)[:, :H].astype(jnp.float32)
        return jnp.concatenate([packed_f, packed_b], axis=-1)

    return run(x_bt, lens, idx, wihf, bf, whhf, wihb, bb, whhb)


# ---------------- pure-numpy reference (PyTorch packed-LSTM semantics) -------
def _sigmoid(x):
    return 1.0 / (1.0 + np.exp(-x))


def ref_packed(x, lengths, p):
    B, T, H = x.shape

    def run(xs, wih, whh, bih, bhh):
        h = np.zeros((H,), np.float32)
        c = np.zeros((H,), np.float32)
        outs = []
        for xt in xs:
            g = wih @ xt + bih + whh @ h + bhh
            i = _sigmoid(g[0:H])
            f = _sigmoid(g[H:2 * H])
            gg = np.tanh(g[2 * H:3 * H])
            o = _sigmoid(g[3 * H:4 * H])
            c = f * c + i * gg
            h = o * np.tanh(c)
            outs.append(h.copy())
        return np.stack(outs) if outs else np.zeros((0, H), np.float32)

    padded = np.zeros((T, B, 2 * H), np.float32)
    for b in range(B):
        L = int(lengths[b])
        fwd = run(x[b, :L], p["w_ih_f"], p["w_hh_f"], p["b_ih_f"], p["b_hh_f"])
        bwd = run(x[b, :L][::-1],
                  p["w_ih_b"], p["w_hh_b"], p["b_ih_b"], p["b_hh_b"])[::-1]
        padded[:L, b, :H] = fwd
        padded[:L, b, H:] = bwd
    pieces = []
    for t in range(T):
        bs = sum(1 for l in lengths if l > t)
        if bs > 0:
            pieces.append(padded[t, :bs])
    return np.concatenate(pieces, axis=0)


if __name__ == "__main__":
    B, T, H = 4, 8, 32   # batch, seq, hidden (LSTM input size == hidden_size)
    key = jax.random.PRNGKey(0)
    ks = jax.random.split(key, 9)
    bound = 1.0 / np.sqrt(H)

    def u(kk, shape):
        return jax.random.uniform(kk, shape, jnp.float32, -bound, bound)

    params = {
        "w_ih_f": u(ks[0], (4 * H, H)), "w_hh_f": u(ks[1], (4 * H, H)),
        "b_ih_f": u(ks[2], (4 * H,)),   "b_hh_f": u(ks[3], (4 * H,)),
        "w_ih_b": u(ks[4], (4 * H, H)), "w_hh_b": u(ks[5], (4 * H, H)),
        "b_ih_b": u(ks[6], (4 * H,)),   "b_hh_b": u(ks[7], (4 * H,)),
    }
    x = jax.random.normal(ks[8], (B, T, H), jnp.float32)
    # pack_padded_sequence (enforce_sorted=True default) => sorted descending
    seq_lengths = [8, 6, 5, 3]

    # time_chunk=4 -> 2 grid chunks: exercises the cross-chunk state carry.
    out = bilstm_packed_forward(x, seq_lengths, params, time_chunk=4)
    out = jax.block_until_ready(out)
    assert out.shape == (sum(seq_lengths), 2 * H)

    ref = ref_packed(np.asarray(x, np.float32), seq_lengths,
                     {k2: np.asarray(v, np.float32) for k2, v in params.items()})
    # bf16 matmul operands / gate stream / outputs (f32 state & accumulation)
    # => relaxed tolerance vs the f32 reference
    np.testing.assert_allclose(np.asarray(out), ref, rtol=2e-2, atol=2e-2)

    print("KERNEL_OK")
</pallas_src>

<mosaic_0001>
module attributes {stable_mosaic.version = 11 : i64} {
  func.func @_bilstm_kernel(%arg0: i32, %arg1: memref<32x512xbf16, #tpu.memory_space<vmem>>, %arg2: memref<32x512xbf16, #tpu.memory_space<vmem>>, %arg3: memref<8x1xi32, #tpu.memory_space<vmem>>, %arg4: memref<128x512xbf16, #tpu.memory_space<vmem>>, %arg5: memref<128x512xbf16, #tpu.memory_space<vmem>>, %arg6: memref<32x128xbf16, #tpu.memory_space<vmem>>, %arg7: memref<32x128xbf16, #tpu.memory_space<vmem>>, %arg8: memref<8x128xf32, #tpu.memory_space<vmem>>, %arg9: memref<8x128xf32, #tpu.memory_space<vmem>>, %arg10: memref<8x128xf32, #tpu.memory_space<vmem>>, %arg11: memref<8x128xf32, #tpu.memory_space<vmem>>) attributes {dimension_semantics = [#tpu.dimension_semantics<arbitrary>], iteration_bounds = array<i64: 2>, scalar_prefetch = 0 : i64, scratch_operands = 4 : i64, tpu.core_type = #tpu.core_type<tc>, window_params = [{transform_indices = @transform_0, window_bounds = array<i64: 32, 512>}, {transform_indices = @transform_1, window_bounds = array<i64: 32, 512>}, {pipeline_mode = #tpu.pipeline_mode<synchronous>, transform_indices = @transform_2, window_bounds = array<i64: 8, 1>}, {pipeline_mode = #tpu.pipeline_mode<synchronous>, transform_indices = @transform_3, window_bounds = array<i64: 128, 512>}, {pipeline_mode = #tpu.pipeline_mode<synchronous>, transform_indices = @transform_4, window_bounds = array<i64: 128, 512>}, {transform_indices = @transform_5, window_bounds = array<i64: 32, 128>}, {transform_indices = @transform_6, window_bounds = array<i64: 32, 128>}]} {
    %c0_i32 = arith.constant 0 : i32
    %0 = arith.cmpi eq, %arg0, %c0_i32 : i32
    %1 = arith.extui %0 : i1 to i32
    %c0_i32_0 = arith.constant 0 : i32
    %2 = arith.cmpi ne, %1, %c0_i32_0 : i32
    scf.if %2 {
      %cst_126 = arith.constant 0.000000e+00 : f32
      %400 = vector.broadcast %cst_126 : f32 to vector<8x128xf32>
      %c0_127 = arith.constant 0 : index
      %c0_128 = arith.constant 0 : index
      %401 = vector.load %arg8[%c0_127, %c0_128] : memref<8x128xf32, #tpu.memory_space<vmem>>, vector<8x128xf32>
      tpu.vector_store %arg8[%c0_127, %c0_128], %400 {strides = array<i32>} : memref<8x128xf32, #tpu.memory_space<vmem>>, vector<8x128xf32>,
      %cst_129 = arith.constant 0.000000e+00 : f32
      %402 = vector.broadcast %cst_129 : f32 to vector<8x128xf32>
      %c0_130 = arith.constant 0 : index
      %c0_131 = arith.constant 0 : index
      %403 = vector.load %arg9[%c0_130, %c0_131] : memref<8x128xf32, #tpu.memory_space<vmem>>, vector<8x128xf32>
      tpu.vector_store %arg9[%c0_130, %c0_131], %402 {strides = array<i32>} : memref<8x128xf32, #tpu.memory_space<vmem>>, vector<8x128xf32>,
      %cst_132 = arith.constant 0.000000e+00 : f32
      %404 = vector.broadcast %cst_132 : f32 to vector<8x128xf32>
      %c0_133 = arith.constant 0 : index
      %c0_134 = arith.constant 0 : index
      %405 = vector.load %arg10[%c0_133, %c0_134] : memref<8x128xf32, #tpu.memory_space<vmem>>, vector<8x128xf32>
      tpu.vector_store %arg10[%c0_133, %c0_134], %404 {strides = array<i32>} : memref<8x128xf32, #tpu.memory_space<vmem>>, vector<8x128xf32>,
      %cst_135 = arith.constant 0.000000e+00 : f32
      %406 = vector.broadcast %cst_135 : f32 to vector<8x128xf32>
      %c0_136 = arith.constant 0 : index
      %c0_137 = arith.constant 0 : index
      %407 = vector.load %arg11[%c0_136, %c0_137] : memref<8x128xf32, #tpu.memory_space<vmem>>, vector<8x128xf32>
      tpu.vector_store %arg11[%c0_136, %c0_137], %406 {strides = array<i32>} : memref<8x128xf32, #tpu.memory_space<vmem>>, vector<8x128xf32>,
    } else {
    }
    %c0 = arith.constant 0 : index
    %c0_1 = arith.constant 0 : index
    %3 = vector.load %arg3[%c0, %c0_1] : memref<8x1xi32, #tpu.memory_space<vmem>>, vector<8x1xi32>
    %c0_2 = arith.constant 0 : index
    %c0_3 = arith.constant 0 : index
    %4 = vector.load %arg8[%c0_2, %c0_3] : memref<8x128xf32, #tpu.memory_space<vmem>>, vector<8x128xf32>
    %c0_4 = arith.constant 0 : index
    %c0_5 = arith.constant 0 : index
    %5 = vector.load %arg9[%c0_4, %c0_5] : memref<8x128xf32, #tpu.memory_space<vmem>>, vector<8x128xf32>
    %c0_6 = arith.constant 0 : index
    %c0_7 = arith.constant 0 : index
    %6 = vector.load %arg10[%c0_6, %c0_7] : memref<8x128xf32, #tpu.memory_space<vmem>>, vector<8x128xf32>
    %c0_8 = arith.constant 0 : index
    %c0_9 = arith.constant 0 : index
    %7 = vector.load %arg11[%c0_8, %c0_9] : memref<8x128xf32, #tpu.memory_space<vmem>>, vector<8x128xf32>
    %c4_i32 = arith.constant 4 : i32
    %8 = arith.muli %arg0, %c4_i32 : i32
    %c0_i32_10 = arith.constant 0 : i32
    %9 = arith.addi %8, %c0_i32_10 : i32
    %c1_i32 = arith.constant 1 : i32
    %10 = arith.subi %c1_i32, %arg0 : i32
    %c4_i32_11 = arith.constant 4 : i32
    %11 = arith.muli %10, %c4_i32_11 : i32
    %c3_i32 = arith.constant 3 : i32
    %12 = arith.addi %11, %c3_i32 : i32
    %c0_12 = arith.constant 0 : index
    %c0_13 = arith.constant 0 : index
    %13 = vector.load %arg1[%c0_12, %c0_13] : memref<32x512xbf16, #tpu.memory_space<vmem>>, vector<8x512xbf16>
    %14 = arith.extf %13 : vector<8x512xbf16> to vector<8x512xf32>
    %15 = arith.truncf %4 : vector<8x128xf32> to vector<8x128xbf16>
    %c0_14 = arith.constant 0 : index
    %c0_15 = arith.constant 0 : index
    %16 = vector.load %arg4[%c0_14, %c0_15] : memref<128x512xbf16, #tpu.memory_space<vmem>>, vector<128x512xbf16>
    %cst = arith.constant dense<0.000000e+00> : vector<8x512xf32>
    %17 = tpu.matmul %15, %16, %cst {dimension_numbers = #tpu.dot_dimension_numbers<[1], [0], [0], [1], [0, 0, 1, 1], [], []>} : vector<8x128xbf16>, vector<128x512xbf16>, vector<8x512xf32> -> vector<8x512xf32>
    %18 = arith.addf %14, %17 : vector<8x512xf32>
    %19 = vector.extract_strided_slice %18 {offsets = [0, 0], sizes = [8, 128], strides = [1, 1]} : vector<8x512xf32> to vector<8x128xf32>
    %20 = arith.negf %19 : vector<8x128xf32>
    %21 = math.exp %20 : vector<8x128xf32>
    %cst_16 = arith.constant 1.000000e+00 : f32
    %22 = vector.broadcast %cst_16 : f32 to vector<8x128xf32>
    %23 = arith.addf %22, %21 : vector<8x128xf32>
    %24 = arith.divf %22, %23 : vector<8x128xf32>
    %25 = vector.extract_strided_slice %18 {offsets = [0, 128], sizes = [8, 128], strides = [1, 1]} : vector<8x512xf32> to vector<8x128xf32>
    %26 = arith.negf %25 : vector<8x128xf32>
    %27 = math.exp %26 : vector<8x128xf32>
    %cst_17 = arith.constant 1.000000e+00 : f32
    %28 = vector.broadcast %cst_17 : f32 to vector<8x128xf32>
    %29 = arith.addf %28, %27 : vector<8x128xf32>
    %30 = arith.divf %28, %29 : vector<8x128xf32>
    %31 = vector.extract_strided_slice %18 {offsets = [0, 256], sizes = [8, 128], strides = [1, 1]} : vector<8x512xf32> to vector<8x128xf32>
    %32 = math.tanh %31 : vector<8x128xf32>
    %33 = vector.extract_strided_slice %18 {offsets = [0, 384], sizes = [8, 128], strides = [1, 1]} : vector<8x512xf32> to vector<8x128xf32>
    %34 = arith.negf %33 : vector<8x128xf32>
    %35 = math.exp %34 : vector<8x128xf32>
    %cst_18 = arith.constant 1.000000e+00 : f32
    %36 = vector.broadcast %cst_18 : f32 to vector<8x128xf32>
    %37 = arith.addf %36, %35 : vector<8x128xf32>
    %38 = arith.divf %36, %37 : vector<8x128xf32>
    %39 = arith.mulf %30, %5 : vector<8x128xf32>
    %40 = arith.mulf %24, %32 : vector<8x128xf32>
    %41 = arith.addf %39, %40 : vector<8x128xf32>
    %42 = math.tanh %41 : vector<8x128xf32>
    %43 = arith.mulf %38, %42 : vector<8x128xf32>
    %44 = vector.broadcast %9 : i32 to vector<8x1xi32>
    %45 = arith.cmpi sgt, %3, %44 : vector<8x1xi32>
    %46 = vector.shape_cast %45 : vector<8x1xi1> to vector<8x1xi1>
    %47 = vector.broadcast %46 : vector<8x1xi1> to vector<8x128xi1>
    %48 = arith.select %47, %43, %4 : vector<8x128xi1>, vector<8x128xf32>
    %49 = vector.shape_cast %45 : vector<8x1xi1> to vector<8x1xi1>
    %50 = vector.broadcast %49 : vector<8x1xi1> to vector<8x128xi1>
    %51 = arith.select %50, %41, %5 : vector<8x128xi1>, vector<8x128xf32>
    %cst_19 = arith.constant 0.000000e+00 : f32
    %52 = vector.shape_cast %45 : vector<8x1xi1> to vector<8x1xi1>
    %53 = vector.broadcast %52 : vector<8x1xi1> to vector<8x128xi1>
    %54 = vector.broadcast %cst_19 : f32 to vector<8x128xf32>
    %55 = arith.select %53, %43, %54 : vector<8x128xi1>, vector<8x128xf32>
    %56 = arith.truncf %55 : vector<8x128xf32> to vector<8x128xbf16>
    %c0_20 = arith.constant 0 : index
    %c0_21 = arith.constant 0 : index
    %57 = vector.load %arg6[%c0_20, %c0_21] : memref<32x128xbf16, #tpu.memory_space<vmem>>, vector<8x128xbf16>
    tpu.vector_store %arg6[%c0_20, %c0_21], %56 {strides = array<i32>} : memref<32x128xbf16, #tpu.memory_space<vmem>>, vector<8x128xbf16>,
    %c24 = arith.constant 24 : index
    %c0_22 = arith.constant 0 : index
    %58 = vector.load %arg2[%c24, %c0_22] : memref<32x512xbf16, #tpu.memory_space<vmem>>, vector<8x512xbf16>
    %59 = arith.extf %58 : vector<8x512xbf16> to vector<8x512xf32>
    %60 = arith.truncf %6 : vector<8x128xf32> to vector<8x128xbf16>
    %c0_23 = arith.constant 0 : index
    %c0_24 = arith.constant 0 : index
    %61 = vector.load %arg5[%c0_23, %c0_24] : memref<128x512xbf16, #tpu.memory_space<vmem>>, vector<128x512xbf16>
    %cst_25 = arith.constant dense<0.000000e+00> : vector<8x512xf32>
    %62 = tpu.matmul %60, %61, %cst_25 {dimension_numbers = #tpu.dot_dimension_numbers<[1], [0], [0], [1], [0, 0, 1, 1], [], []>} : vector<8x128xbf16>, vector<128x512xbf16>, vector<8x512xf32> -> vector<8x512xf32>
    %63 = arith.addf %59, %62 : vector<8x512xf32>
    %64 = vector.extract_strided_slice %63 {offsets = [0, 0], sizes = [8, 128], strides = [1, 1]} : vector<8x512xf32> to vector<8x128xf32>
    %65 = arith.negf %64 : vector<8x128xf32>
    %66 = math.exp %65 : vector<8x128xf32>
    %cst_26 = arith.constant 1.000000e+00 : f32
    %67 = vector.broadcast %cst_26 : f32 to vector<8x128xf32>
    %68 = arith.addf %67, %66 : vector<8x128xf32>
    %69 = arith.divf %67, %68 : vector<8x128xf32>
    %70 = vector.extract_strided_slice %63 {offsets = [0, 128], sizes = [8, 128], strides = [1, 1]} : vector<8x512xf32> to vector<8x128xf32>
    %71 = arith.negf %70 : vector<8x128xf32>
    %72 = math.exp %71 : vector<8x128xf32>
    %cst_27 = arith.constant 1.000000e+00 : f32
    %73 = vector.broadcast %cst_27 : f32 to vector<8x128xf32>
    %74 = arith.addf %73, %72 : vector<8x128xf32>
    %75 = arith.divf %73, %74 : vector<8x128xf32>
    %76 = vector.extract_strided_slice %63 {offsets = [0, 256], sizes = [8, 128], strides = [1, 1]} : vector<8x512xf32> to vector<8x128xf32>
    %77 = math.tanh %76 : vector<8x128xf32>
    %78 = vector.extract_strided_slice %63 {offsets = [0, 384], sizes = [8, 128], strides = [1, 1]} : vector<8x512xf32> to vector<8x128xf32>
    %79 = arith.negf %78 : vector<8x128xf32>
    %80 = math.exp %79 : vector<8x128xf32>
    %cst_28 = arith.constant 1.000000e+00 : f32
    %81 = vector.broadcast %cst_28 : f32 to vector<8x128xf32>
    %82 = arith.addf %81, %80 : vector<8x128xf32>
    %83 = arith.divf %81, %82 : vector<8x128xf32>
    %84 = arith.mulf %75, %7 : vector<8x128xf32>
    %85 = arith.mulf %69, %77 : vector<8x128xf32>
    %86 = arith.addf %84, %85 : vector<8x128xf32>
    %87 = math.tanh %86 : vector<8x128xf32>
    %88 = arith.mulf %83, %87 : vector<8x128xf32>
    %89 = vector.broadcast %12 : i32 to vector<8x1xi32>
    %90 = arith.cmpi sgt, %3, %89 : vector<8x1xi32>
    %cst_29 = arith.constant 0.000000e+00 : f32
    %91 = vector.shape_cast %90 : vector<8x1xi1> to vector<8x1xi1>
    %92 = vector.broadcast %91 : vector<8x1xi1> to vector<8x128xi1>
    %93 = vector.broadcast %cst_29 : f32 to vector<8x128xf32>
    %94 = arith.select %92, %88, %93 : vector<8x128xi1>, vector<8x128xf32>
    %cst_30 = arith.constant 0.000000e+00 : f32
    %95 = vector.shape_cast %90 : vector<8x1xi1> to vector<8x1xi1>
    %96 = vector.broadcast %95 : vector<8x1xi1> to vector<8x128xi1>
    %97 = vector.broadcast %cst_30 : f32 to vector<8x128xf32>
    %98 = arith.select %96, %86, %97 : vector<8x128xi1>, vector<8x128xf32>
    %cst_31 = arith.constant 0.000000e+00 : f32
    %99 = vector.shape_cast %90 : vector<8x1xi1> to vector<8x1xi1>
    %100 = vector.broadcast %99 : vector<8x1xi1> to vector<8x128xi1>
    %101 = vector.broadcast %cst_31 : f32 to vector<8x128xf32>
    %102 = arith.select %100, %88, %101 : vector<8x128xi1>, vector<8x128xf32>
    %103 = arith.truncf %102 : vector<8x128xf32> to vector<8x128xbf16>
    %c24_32 = arith.constant 24 : index
    %c0_33 = arith.constant 0 : index
    %104 = vector.load %arg7[%c24_32, %c0_33] : memref<32x128xbf16, #tpu.memory_space<vmem>>, vector<8x128xbf16>
    tpu.vector_store %arg7[%c24_32, %c0_33], %103 {strides = array<i32>} : memref<32x128xbf16, #tpu.memory_space<vmem>>, vector<8x128xbf16>,
    %c4_i32_34 = arith.constant 4 : i32
    %105 = arith.muli %arg0, %c4_i32_34 : i32
    %c1_i32_35 = arith.constant 1 : i32
    %106 = arith.addi %105, %c1_i32_35 : i32
    %c1_i32_36 = arith.constant 1 : i32
    %107 = arith.subi %c1_i32_36, %arg0 : i32
    %c4_i32_37 = arith.constant 4 : i32
    %108 = arith.muli %107, %c4_i32_37 : i32
    %c2_i32 = arith.constant 2 : i32
    %109 = arith.addi %108, %c2_i32 : i32
    %c8 = arith.constant 8 : index
    %c0_38 = arith.constant 0 : index
    %110 = vector.load %arg1[%c8, %c0_38] : memref<32x512xbf16, #tpu.memory_space<vmem>>, vector<8x512xbf16>
    %111 = arith.extf %110 : vector<8x512xbf16> to vector<8x512xf32>
    %112 = arith.truncf %48 : vector<8x128xf32> to vector<8x128xbf16>
    %c0_39 = arith.constant 0 : index
    %c0_40 = arith.constant 0 : index
    %113 = vector.load %arg4[%c0_39, %c0_40] : memref<128x512xbf16, #tpu.memory_space<vmem>>, vector<128x512xbf16>
    %cst_41 = arith.constant dense<0.000000e+00> : vector<8x512xf32>
    %114 = tpu.matmul %112, %113, %cst_41 {dimension_numbers = #tpu.dot_dimension_numbers<[1], [0], [0], [1], [0, 0, 1, 1], [], []>} : vector<8x128xbf16>, vector<128x512xbf16>, vector<8x512xf32> -> vector<8x512xf32>
    %115 = arith.addf %111, %114 : vector<8x512xf32>
    %116 = vector.extract_strided_slice %115 {offsets = [0, 0], sizes = [8, 128], strides = [1, 1]} : vector<8x512xf32> to vector<8x128xf32>
    %117 = arith.negf %116 : vector<8x128xf32>
    %118 = math.exp %117 : vector<8x128xf32>
    %cst_42 = arith.constant 1.000000e+00 : f32
    %119 = vector.broadcast %cst_42 : f32 to vector<8x128xf32>
    %120 = arith.addf %119, %118 : vector<8x128xf32>
    %121 = arith.divf %119, %120 : vector<8x128xf32>
    %122 = vector.extract_strided_slice %115 {offsets = [0, 128], sizes = [8, 128], strides = [1, 1]} : vector<8x512xf32> to vector<8x128xf32>
    %123 = arith.negf %122 : vector<8x128xf32>
    %124 = math.exp %123 : vector<8x128xf32>
    %cst_43 = arith.constant 1.000000e+00 : f32
    %125 = vector.broadcast %cst_43 : f32 to vector<8x128xf32>
    %126 = arith.addf %125, %124 : vector<8x128xf32>
    %127 = arith.divf %125, %126 : vector<8x128xf32>
    %128 = vector.extract_strided_slice %115 {offsets = [0, 256], sizes = [8, 128], strides = [1, 1]} : vector<8x512xf32> to vector<8x128xf32>
    %129 = math.tanh %128 : vector<8x128xf32>
    %130 = vector.extract_strided_slice %115 {offsets = [0, 384], sizes = [8, 128], strides = [1, 1]} : vector<8x512xf32> to vector<8x128xf32>
    %131 = arith.negf %130 : vector<8x128xf32>
    %132 = math.exp %131 : vector<8x128xf32>
    %cst_44 = arith.constant 1.000000e+00 : f32
    %133 = vector.broadcast %cst_44 : f32 to vector<8x128xf32>
    %134 = arith.addf %133, %132 : vector<8x128xf32>
    %135 = arith.divf %133, %134 : vector<8x128xf32>
    %136 = arith.mulf %127, %51 : vector<8x128xf32>
    %137 = arith.mulf %121, %129 : vector<8x128xf32>
    %138 = arith.addf %136, %137 : vector<8x128xf32>
    %139 = math.tanh %138 : vector<8x128xf32>
    %140 = arith.mulf %135, %139 : vector<8x128xf32>
    %141 = vector.broadcast %106 : i32 to vector<8x1xi32>
    %142 = arith.cmpi sgt, %3, %141 : vector<8x1xi32>
    %143 = vector.shape_cast %142 : vector<8x1xi1> to vector<8x1xi1>
    %144 = vector.broadcast %143 : vector<8x1xi1> to vector<8x128xi1>
    %145 = arith.select %144, %140, %48 : vector<8x128xi1>, vector<8x128xf32>
    %146 = vector.shape_cast %142 : vector<8x1xi1> to vector<8x1xi1>
    %147 = vector.broadcast %146 : vector<8x1xi1> to vector<8x128xi1>
    %148 = arith.select %147, %138, %51 : vector<8x128xi1>, vector<8x128xf32>
    %cst_45 = arith.constant 0.000000e+00 : f32
    %149 = vector.shape_cast %142 : vector<8x1xi1> to vector<8x1xi1>
    %150 = vector.broadcast %149 : vector<8x1xi1> to vector<8x128xi1>
    %151 = vector.broadcast %cst_45 : f32 to vector<8x128xf32>
    %152 = arith.select %150, %140, %151 : vector<8x128xi1>, vector<8x128xf32>
    %153 = arith.truncf %152 : vector<8x128xf32> to vector<8x128xbf16>
    %c8_46 = arith.constant 8 : index
    %c0_47 = arith.constant 0 : index
    %154 = vector.load %arg6[%c8_46, %c0_47] : memref<32x128xbf16, #tpu.memory_space<vmem>>, vector<8x128xbf16>
    tpu.vector_store %arg6[%c8_46, %c0_47], %153 {strides = array<i32>} : memref<32x128xbf16, #tpu.memory_space<vmem>>, vector<8x128xbf16>,
    %c16 = arith.constant 16 : index
    %c0_48 = arith.constant 0 : index
    %155 = vector.load %arg2[%c16, %c0_48] : memref<32x512xbf16, #tpu.memory_space<vmem>>, vector<8x512xbf16>
    %156 = arith.extf %155 : vector<8x512xbf16> to vector<8x512xf32>
    %157 = arith.truncf %94 : vector<8x128xf32> to vector<8x128xbf16>
    %c0_49 = arith.constant 0 : index
    %c0_50 = arith.constant 0 : index
    %158 = vector.load %arg5[%c0_49, %c0_50] : memref<128x512xbf16, #tpu.memory_space<vmem>>, vector<128x512xbf16>
    %cst_51 = arith.constant dense<0.000000e+00> : vector<8x512xf32>
    %159 = tpu.matmul %157, %158, %cst_51 {dimension_numbers = #tpu.dot_dimension_numbers<[1], [0], [0], [1], [0, 0, 1, 1], [], []>} : vector<8x128xbf16>, vector<128x512xbf16>, vector<8x512xf32> -> vector<8x512xf32>
    %160 = arith.addf %156, %159 : vector<8x512xf32>
    %161 = vector.extract_strided_slice %160 {offsets = [0, 0], sizes = [8, 128], strides = [1, 1]} : vector<8x512xf32> to vector<8x128xf32>
    %162 = arith.negf %161 : vector<8x128xf32>
    %163 = math.exp %162 : vector<8x128xf32>
    %cst_52 = arith.constant 1.000000e+00 : f32
    %164 = vector.broadcast %cst_52 : f32 to vector<8x128xf32>
    %165 = arith.addf %164, %163 : vector<8x128xf32>
    %166 = arith.divf %164, %165 : vector<8x128xf32>
    %167 = vector.extract_strided_slice %160 {offsets = [0, 128], sizes = [8, 128], strides = [1, 1]} : vector<8x512xf32> to vector<8x128xf32>
    %168 = arith.negf %167 : vector<8x128xf32>
    %169 = math.exp %168 : vector<8x128xf32>
    %cst_53 = arith.constant 1.000000e+00 : f32
    %170 = vector.broadcast %cst_53 : f32 to vector<8x128xf32>
    %171 = arith.addf %170, %169 : vector<8x128xf32>
    %172 = arith.divf %170, %171 : vector<8x128xf32>
    %173 = vector.extract_strided_slice %160 {offsets = [0, 256], sizes = [8, 128], strides = [1, 1]} : vector<8x512xf32> to vector<8x128xf32>
    %174 = math.tanh %173 : vector<8x128xf32>
    %175 = vector.extract_strided_slice %160 {offsets = [0, 384], sizes = [8, 128], strides = [1, 1]} : vector<8x512xf32> to vector<8x128xf32>
    %176 = arith.negf %175 : vector<8x128xf32>
    %177 = math.exp %176 : vector<8x128xf32>
    %cst_54 = arith.constant 1.000000e+00 : f32
    %178 = vector.broadcast %cst_54 : f32 to vector<8x128xf32>
    %179 = arith.addf %178, %177 : vector<8x128xf32>
    %180 = arith.divf %178, %179 : vector<8x128xf32>
    %181 = arith.mulf %172, %98 : vector<8x128xf32>
    %182 = arith.mulf %166, %174 : vector<8x128xf32>
    %183 = arith.addf %181, %182 : vector<8x128xf32>
    %184 = math.tanh %183 : vector<8x128xf32>
    %185 = arith.mulf %180, %184 : vector<8x128xf32>
    %186 = vector.broadcast %109 : i32 to vector<8x1xi32>
    %187 = arith.cmpi sgt, %3, %186 : vector<8x1xi32>
    %cst_55 = arith.constant 0.000000e+00 : f32
    %188 = vector.shape_cast %187 : vector<8x1xi1> to vector<8x1xi1>
    %189 = vector.broadcast %188 : vector<8x1xi1> to vector<8x128xi1>
    %190 = vector.broadcast %cst_55 : f32 to vector<8x128xf32>
    %191 = arith.select %189, %185, %190 : vector<8x128xi1>, vector<8x128xf32>
    %cst_56 = arith.constant 0.000000e+00 : f32
    %192 = vector.shape_cast %187 : vector<8x1xi1> to vector<8x1xi1>
    %193 = vector.broadcast %192 : vector<8x1xi1> to vector<8x128xi1>
    %194 = vector.broadcast %cst_56 : f32 to vector<8x128xf32>
    %195 = arith.select %193, %183, %194 : vector<8x128xi1>, vector<8x128xf32>
    %cst_57 = arith.constant 0.000000e+00 : f32
    %196 = vector.shape_cast %187 : vector<8x1xi1> to vector<8x1xi1>
    %197 = vector.broadcast %196 : vector<8x1xi1> to vector<8x128xi1>
    %198 = vector.broadcast %cst_57 : f32 to vector<8x128xf32>
    %199 = arith.select %197, %185, %198 : vector<8x128xi1>, vector<8x128xf32>
    %200 = arith.truncf %199 : vector<8x128xf32> to vector<8x128xbf16>
    %c16_58 = arith.constant 16 : index
    %c0_59 = arith.constant 0 : index
    %201 = vector.load %arg7[%c16_58, %c0_59] : memref<32x128xbf16, #tpu.memory_space<vmem>>, vector<8x128xbf16>
    tpu.vector_store %arg7[%c16_58, %c0_59], %200 {strides = array<i32>} : memref<32x128xbf16, #tpu.memory_space<vmem>>, vector<8x128xbf16>,
    %c4_i32_60 = arith.constant 4 : i32
    %202 = arith.muli %arg0, %c4_i32_60 : i32
    %c2_i32_61 = arith.constant 2 : i32
    %203 = arith.addi %202, %c2_i32_61 : i32
    %c1_i32_62 = arith.constant 1 : i32
    %204 = arith.subi %c1_i32_62, %arg0 : i32
    %c4_i32_63 = arith.constant 4 : i32
    %205 = arith.muli %204, %c4_i32_63 : i32
    %c1_i32_64 = arith.constant 1 : i32
    %206 = arith.addi %205, %c1_i32_64 : i32
    %c16_65 = arith.constant 16 : index
    %c0_66 = arith.constant 0 : index
    %207 = vector.load %arg1[%c16_65, %c0_66] : memref<32x512xbf16, #tpu.memory_space<vmem>>, vector<8x512xbf16>
    %208 = arith.extf %207 : vector<8x512xbf16> to vector<8x512xf32>
    %209 = arith.truncf %145 : vector<8x128xf32> to vector<8x128xbf16>
    %c0_67 = arith.constant 0 : index
    %c0_68 = arith.constant 0 : index
    %210 = vector.load %arg4[%c0_67, %c0_68] : memref<128x512xbf16, #tpu.memory_space<vmem>>, vector<128x512xbf16>
    %cst_69 = arith.constant dense<0.000000e+00> : vector<8x512xf32>
    %211 = tpu.matmul %209, %210, %cst_69 {dimension_numbers = #tpu.dot_dimension_numbers<[1], [0], [0], [1], [0, 0, 1, 1], [], []>} : vector<8x128xbf16>, vector<128x512xbf16>, vector<8x512xf32> -> vector<8x512xf32>
    %212 = arith.addf %208, %211 : vector<8x512xf32>
    %213 = vector.extract_strided_slice %212 {offsets = [0, 0], sizes = [8, 128], strides = [1, 1]} : vector<8x512xf32> to vector<8x128xf32>
    %214 = arith.negf %213 : vector<8x128xf32>
    %215 = math.exp %214 : vector<8x128xf32>
    %cst_70 = arith.constant 1.000000e+00 : f32
    %216 = vector.broadcast %cst_70 : f32 to vector<8x128xf32>
    %217 = arith.addf %216, %215 : vector<8x128xf32>
    %218 = arith.divf %216, %217 : vector<8x128xf32>
    %219 = vector.extract_strided_slice %212 {offsets = [0, 128], sizes = [8, 128], strides = [1, 1]} : vector<8x512xf32> to vector<8x128xf32>
    %220 = arith.negf %219 : vector<8x128xf32>
    %221 = math.exp %220 : vector<8x128xf32>
    %cst_71 = arith.constant 1.000000e+00 : f32
    %222 = vector.broadcast %cst_71 : f32 to vector<8x128xf32>
    %223 = arith.addf %222, %221 : vector<8x128xf32>
    %224 = arith.divf %222, %223 : vector<8x128xf32>
    %225 = vector.extract_strided_slice %212 {offsets = [0, 256], sizes = [8, 128], strides = [1, 1]} : vector<8x512xf32> to vector<8x128xf32>
    %226 = math.tanh %225 : vector<8x128xf32>
    %227 = vector.extract_strided_slice %212 {offsets = [0, 384], sizes = [8, 128], strides = [1, 1]} : vector<8x512xf32> to vector<8x128xf32>
    %228 = arith.negf %227 : vector<8x128xf32>
    %229 = math.exp %228 : vector<8x128xf32>
    %cst_72 = arith.constant 1.000000e+00 : f32
    %230 = vector.broadcast %cst_72 : f32 to vector<8x128xf32>
    %231 = arith.addf %230, %229 : vector<8x128xf32>
    %232 = arith.divf %230, %231 : vector<8x128xf32>
    %233 = arith.mulf %224, %148 : vector<8x128xf32>
    %234 = arith.mulf %218, %226 : vector<8x128xf32>
    %235 = arith.addf %233, %234 : vector<8x128xf32>
    %236 = math.tanh %235 : vector<8x128xf32>
    %237 = arith.mulf %232, %236 : vector<8x128xf32>
    %238 = vector.broadcast %203 : i32 to vector<8x1xi32>
    %239 = arith.cmpi sgt, %3, %238 : vector<8x1xi32>
    %240 = vector.shape_cast %239 : vector<8x1xi1> to vector<8x1xi1>
    %241 = vector.broadcast %240 : vector<8x1xi1> to vector<8x128xi1>
    %242 = arith.select %241, %237, %145 : vector<8x128xi1>, vector<8x128xf32>
    %243 = vector.shape_cast %239 : vector<8x1xi1> to vector<8x1xi1>
    %244 = vector.broadcast %243 : vector<8x1xi1> to vector<8x128xi1>
    %245 = arith.select %244, %235, %148 : vector<8x128xi1>, vector<8x128xf32>
    %cst_73 = arith.constant 0.000000e+00 : f32
    %246 = vector.shape_cast %239 : vector<8x1xi1> to vector<8x1xi1>
    %247 = vector.broadcast %246 : vector<8x1xi1> to vector<8x128xi1>
    %248 = vector.broadcast %cst_73 : f32 to vector<8x128xf32>
    %249 = arith.select %247, %237, %248 : vector<8x128xi1>, vector<8x128xf32>
    %250 = arith.truncf %249 : vector<8x128xf32> to vector<8x128xbf16>
    %c16_74 = arith.constant 16 : index
    %c0_75 = arith.constant 0 : index
    %251 = vector.load %arg6[%c16_74, %c0_75] : memref<32x128xbf16, #tpu.memory_space<vmem>>, vector<8x128xbf16>
    tpu.vector_store %arg6[%c16_74, %c0_75], %250 {strides = array<i32>} : memref<32x128xbf16, #tpu.memory_space<vmem>>, vector<8x128xbf16>,
    %c8_76 = arith.constant 8 : index
    %c0_77 = arith.constant 0 : index
    %252 = vector.load %arg2[%c8_76, %c0_77] : memref<32x512xbf16, #tpu.memory_space<vmem>>, vector<8x512xbf16>
    %253 = arith.extf %252 : vector<8x512xbf16> to vector<8x512xf32>
    %254 = arith.truncf %191 : vector<8x128xf32> to vector<8x128xbf16>
    %c0_78 = arith.constant 0 : index
    %c0_79 = arith.constant 0 : index
    %255 = vector.load %arg5[%c0_78, %c0_79] : memref<128x512xbf16, #tpu.memory_space<vmem>>, vector<128x512xbf16>
    %cst_80 = arith.constant dense<0.000000e+00> : vector<8x512xf32>
    %256 = tpu.matmul %254, %255, %cst_80 {dimension_numbers = #tpu.dot_dimension_numbers<[1], [0], [0], [1], [0, 0, 1, 1], [], []>} : vector<8x128xbf16>, vector<128x512xbf16>, vector<8x512xf32> -> vector<8x512xf32>
    %257 = arith.addf %253, %256 : vector<8x512xf32>
    %258 = vector.extract_strided_slice %257 {offsets = [0, 0], sizes = [8, 128], strides = [1, 1]} : vector<8x512xf32> to vector<8x128xf32>
    %259 = arith.negf %258 : vector<8x128xf32>
    %260 = math.exp %259 : vector<8x128xf32>
    %cst_81 = arith.constant 1.000000e+00 : f32
    %261 = vector.broadcast %cst_81 : f32 to vector<8x128xf32>
    %262 = arith.addf %261, %260 : vector<8x128xf32>
    %263 = arith.divf %261, %262 : vector<8x128xf32>
    %264 = vector.extract_strided_slice %257 {offsets = [0, 128], sizes = [8, 128], strides = [1, 1]} : vector<8x512xf32> to vector<8x128xf32>
    %265 = arith.negf %264 : vector<8x128xf32>
    %266 = math.exp %265 : vector<8x128xf32>
    %cst_82 = arith.constant 1.000000e+00 : f32
    %267 = vector.broadcast %cst_82 : f32 to vector<8x128xf32>
    %268 = arith.addf %267, %266 : vector<8x128xf32>
    %269 = arith.divf %267, %268 : vector<8x128xf32>
    %270 = vector.extract_strided_slice %257 {offsets = [0, 256], sizes = [8, 128], strides = [1, 1]} : vector<8x512xf32> to vector<8x128xf32>
    %271 = math.tanh %270 : vector<8x128xf32>
    %272 = vector.extract_strided_slice %257 {offsets = [0, 384], sizes = [8, 128], strides = [1, 1]} : vector<8x512xf32> to vector<8x128xf32>
    %273 = arith.negf %272 : vector<8x128xf32>
    %274 = math.exp %273 : vector<8x128xf32>
    %cst_83 = arith.constant 1.000000e+00 : f32
    %275 = vector.broadcast %cst_83 : f32 to vector<8x128xf32>
    %276 = arith.addf %275, %274 : vector<8x128xf32>
    %277 = arith.divf %275, %276 : vector<8x128xf32>
    %278 = arith.mulf %269, %195 : vector<8x128xf32>
    %279 = arith.mulf %263, %271 : vector<8x128xf32>
    %280 = arith.addf %278, %279 : vector<8x128xf32>
    %281 = math.tanh %280 : vector<8x128xf32>
    %282 = arith.mulf %277, %281 : vector<8x128xf32>
    %283 = vector.broadcast %206 : i32 to vector<8x1xi32>
    %284 = arith.cmpi sgt, %3, %283 : vector<8x1xi32>
    %cst_84 = arith.constant 0.000000e+00 : f32
    %285 = vector.shape_cast %284 : vector<8x1xi1> to vector<8x1xi1>
    %286 = vector.broadcast %285 : vector<8x1xi1> to vector<8x128xi1>
    %287 = vector.broadcast %cst_84 : f32 to vector<8x128xf32>
    %288 = arith.select %286, %282, %287 : vector<8x128xi1>, vector<8x128xf32>
    %cst_85 = arith.constant 0.000000e+00 : f32
    %289 = vector.shape_cast %284 : vector<8x1xi1> to vector<8x1xi1>
    %290 = vector.broadcast %289 : vector<8x1xi1> to vector<8x128xi1>
    %291 = vector.broadcast %cst_85 : f32 to vector<8x128xf32>
    %292 = arith.select %290, %280, %291 : vector<8x128xi1>, vector<8x128xf32>
    %cst_86 = arith.constant 0.000000e+00 : f32
    %293 = vector.shape_cast %284 : vector<8x1xi1> to vector<8x1xi1>
    %294 = vector.broadcast %293 : vector<8x1xi1> to vector<8x128xi1>
    %295 = vector.broadcast %cst_86 : f32 to vector<8x128xf32>
    %296 = arith.select %294, %282, %295 : vector<8x128xi1>, vector<8x128xf32>
    %297 = arith.truncf %296 : vector<8x128xf32> to vector<8x128xbf16>
    %c8_87 = arith.constant 8 : index
    %c0_88 = arith.constant 0 : index
    %298 = vector.load %arg7[%c8_87, %c0_88] : memref<32x128xbf16, #tpu.memory_space<vmem>>, vector<8x128xbf16>
    tpu.vector_store %arg7[%c8_87, %c0_88], %297 {strides = array<i32>} : memref<32x128xbf16, #tpu.memory_space<vmem>>, vector<8x128xbf16>,
    %c4_i32_89 = arith.constant 4 : i32
    %299 = arith.muli %arg0, %c4_i32_89 : i32
    %c3_i32_90 = arith.constant 3 : i32
    %300 = arith.addi %299, %c3_i32_90 : i32
    %c1_i32_91 = arith.constant 1 : i32
    %301 = arith.subi %c1_i32_91, %arg0 : i32
    %c4_i32_92 = arith.constant 4 : i32
    %302 = arith.muli %301, %c4_i32_92 : i32
    %c0_i32_93 = arith.constant 0 : i32
    %303 = arith.addi %302, %c0_i32_93 : i32
    %c24_94 = arith.constant 24 : index
    %c0_95 = arith.constant 0 : index
    %304 = vector.load %arg1[%c24_94, %c0_95] : memref<32x512xbf16, #tpu.memory_space<vmem>>, vector<8x512xbf16>
    %305 = arith.extf %304 : vector<8x512xbf16> to vector<8x512xf32>
    %306 = arith.truncf %242 : vector<8x128xf32> to vector<8x128xbf16>
    %c0_96 = arith.constant 0 : index
    %c0_97 = arith.constant 0 : index
    %307 = vector.load %arg4[%c0_96, %c0_97] : memref<128x512xbf16, #tpu.memory_space<vmem>>, vector<128x512xbf16>
    %cst_98 = arith.constant dense<0.000000e+00> : vector<8x512xf32>
    %308 = tpu.matmul %306, %307, %cst_98 {dimension_numbers = #tpu.dot_dimension_numbers<[1], [0], [0], [1], [0, 0, 1, 1], [], []>} : vector<8x128xbf16>, vector<128x512xbf16>, vector<8x512xf32> -> vector<8x512xf32>
    %309 = arith.addf %305, %308 : vector<8x512xf32>
    %310 = vector.extract_strided_slice %309 {offsets = [0, 0], sizes = [8, 128], strides = [1, 1]} : vector<8x512xf32> to vector<8x128xf32>
    %311 = arith.negf %310 : vector<8x128xf32>
    %312 = math.exp %311 : vector<8x128xf32>
    %cst_99 = arith.constant 1.000000e+00 : f32
    %313 = vector.broadcast %cst_99 : f32 to vector<8x128xf32>
    %314 = arith.addf %313, %312 : vector<8x128xf32>
    %315 = arith.divf %313, %314 : vector<8x128xf32>
    %316 = vector.extract_strided_slice %309 {offsets = [0, 128], sizes = [8, 128], strides = [1, 1]} : vector<8x512xf32> to vector<8x128xf32>
    %317 = arith.negf %316 : vector<8x128xf32>
    %318 = math.exp %317 : vector<8x128xf32>
    %cst_100 = arith.constant 1.000000e+00 : f32
    %319 = vector.broadcast %cst_100 : f32 to vector<8x128xf32>
    %320 = arith.addf %319, %318 : vector<8x128xf32>
    %321 = arith.divf %319, %320 : vector<8x128xf32>
    %322 = vector.extract_strided_slice %309 {offsets = [0, 256], sizes = [8, 128], strides = [1, 1]} : vector<8x512xf32> to vector<8x128xf32>
    %323 = math.tanh %322 : vector<8x128xf32>
    %324 = vector.extract_strided_slice %309 {offsets = [0, 384], sizes = [8, 128], strides = [1, 1]} : vector<8x512xf32> to vector<8x128xf32>
    %325 = arith.negf %324 : vector<8x128xf32>
    %326 = math.exp %325 : vector<8x128xf32>
    %cst_101 = arith.constant 1.000000e+00 : f32
    %327 = vector.broadcast %cst_101 : f32 to vector<8x128xf32>
    %328 = arith.addf %327, %326 : vector<8x128xf32>
    %329 = arith.divf %327, %328 : vector<8x128xf32>
    %330 = arith.mulf %321, %245 : vector<8x128xf32>
    %331 = arith.mulf %315, %323 : vector<8x128xf32>
    %332 = arith.addf %330, %331 : vector<8x128xf32>
    %333 = math.tanh %332 : vector<8x128xf32>
    %334 = arith.mulf %329, %333 : vector<8x128xf32>
    %335 = vector.broadcast %300 : i32 to vector<8x1xi32>
    %336 = arith.cmpi sgt, %3, %335 : vector<8x1xi32>
    %337 = vector.shape_cast %336 : vector<8x1xi1> to vector<8x1xi1>
    %338 = vector.broadcast %337 : vector<8x1xi1> to vector<8x128xi1>
    %339 = arith.select %338, %334, %242 : vector<8x128xi1>, vector<8x128xf32>
    %340 = vector.shape_cast %336 : vector<8x1xi1> to vector<8x1xi1>
    %341 = vector.broadcast %340 : vector<8x1xi1> to vector<8x128xi1>
    %342 = arith.select %341, %332, %245 : vector<8x128xi1>, vector<8x128xf32>
    %cst_102 = arith.constant 0.000000e+00 : f32
    %343 = vector.shape_cast %336 : vector<8x1xi1> to vector<8x1xi1>
    %344 = vector.broadcast %343 : vector<8x1xi1> to vector<8x128xi1>
    %345 = vector.broadcast %cst_102 : f32 to vector<8x128xf32>
    %346 = arith.select %344, %334, %345 : vector<8x128xi1>, vector<8x128xf32>
    %347 = arith.truncf %346 : vector<8x128xf32> to vector<8x128xbf16>
    %c24_103 = arith.constant 24 : index
    %c0_104 = arith.constant 0 : index
    %348 = vector.load %arg6[%c24_103, %c0_104] : memref<32x128xbf16, #tpu.memory_space<vmem>>, vector<8x128xbf16>
    tpu.vector_store %arg6[%c24_103, %c0_104], %347 {strides = array<i32>} : memref<32x128xbf16, #tpu.memory_space<vmem>>, vector<8x128xbf16>,
    %c0_105 = arith.constant 0 : index
    %c0_106 = arith.constant 0 : index
    %349 = vector.load %arg2[%c0_105, %c0_106] : memref<32x512xbf16, #tpu.memory_space<vmem>>, vector<8x512xbf16>
    %350 = arith.extf %349 : vector<8x512xbf16> to vector<8x512xf32>
    %351 = arith.truncf %288 : vector<8x128xf32> to vector<8x128xbf16>
    %c0_107 = arith.constant 0 : index
    %c0_108 = arith.constant 0 : index
    %352 = vector.load %arg5[%c0_107, %c0_108] : memref<128x512xbf16, #tpu.memory_space<vmem>>, vector<128x512xbf16>
    %cst_109 = arith.constant dense<0.000000e+00> : vector<8x512xf32>
    %353 = tpu.matmul %351, %352, %cst_109 {dimension_numbers = #tpu.dot_dimension_numbers<[1], [0], [0], [1], [0, 0, 1, 1], [], []>} : vector<8x128xbf16>, vector<128x512xbf16>, vector<8x512xf32> -> vector<8x512xf32>
    %354 = arith.addf %350, %353 : vector<8x512xf32>
    %355 = vector.extract_strided_slice %354 {offsets = [0, 0], sizes = [8, 128], strides = [1, 1]} : vector<8x512xf32> to vector<8x128xf32>
    %356 = arith.negf %355 : vector<8x128xf32>
    %357 = math.exp %356 : vector<8x128xf32>
    %cst_110 = arith.constant 1.000000e+00 : f32
    %358 = vector.broadcast %cst_110 : f32 to vector<8x128xf32>
    %359 = arith.addf %358, %357 : vector<8x128xf32>
    %360 = arith.divf %358, %359 : vector<8x128xf32>
    %361 = vector.extract_strided_slice %354 {offsets = [0, 128], sizes = [8, 128], strides = [1, 1]} : vector<8x512xf32> to vector<8x128xf32>
    %362 = arith.negf %361 : vector<8x128xf32>
    %363 = math.exp %362 : vector<8x128xf32>
    %cst_111 = arith.constant 1.000000e+00 : f32
    %364 = vector.broadcast %cst_111 : f32 to vector<8x128xf32>
    %365 = arith.addf %364, %363 : vector<8x128xf32>
    %366 = arith.divf %364, %365 : vector<8x128xf32>
    %367 = vector.extract_strided_slice %354 {offsets = [0, 256], sizes = [8, 128], strides = [1, 1]} : vector<8x512xf32> to vector<8x128xf32>
    %368 = math.tanh %367 : vector<8x128xf32>
    %369 = vector.extract_strided_slice %354 {offsets = [0, 384], sizes = [8, 128], strides = [1, 1]} : vector<8x512xf32> to vector<8x128xf32>
    %370 = arith.negf %369 : vector<8x128xf32>
    %371 = math.exp %370 : vector<8x128xf32>
    %cst_112 = arith.constant 1.000000e+00 : f32
    %372 = vector.broadcast %cst_112 : f32 to vector<8x128xf32>
    %373 = arith.addf %372, %371 : vector<8x128xf32>
    %374 = arith.divf %372, %373 : vector<8x128xf32>
    %375 = arith.mulf %366, %292 : vector<8x128xf32>
    %376 = arith.mulf %360, %368 : vector<8x128xf32>
    %377 = arith.addf %375, %376 : vector<8x128xf32>
    %378 = math.tanh %377 : vector<8x128xf32>
    %379 = arith.mulf %374, %378 : vector<8x128xf32>
    %380 = vector.broadcast %303 : i32 to vector<8x1xi32>
    %381 = arith.cmpi sgt, %3, %380 : vector<8x1xi32>
    %cst_113 = arith.constant 0.000000e+00 : f32
    %382 = vector.shape_cast %381 : vector<8x1xi1> to vector<8x1xi1>
    %383 = vector.broadcast %382 : vector<8x1xi1> to vector<8x128xi1>
    %384 = vector.broadcast %cst_113 : f32 to vector<8x128xf32>
    %385 = arith.select %383, %379, %384 : vector<8x128xi1>, vector<8x128xf32>
    %cst_114 = arith.constant 0.000000e+00 : f32
    %386 = vector.shape_cast %381 : vector<8x1xi1> to vector<8x1xi1>
    %387 = vector.broadcast %386 : vector<8x1xi1> to vector<8x128xi1>
    %388 = vector.broadcast %cst_114 : f32 to vector<8x128xf32>
    %389 = arith.select %387, %377, %388 : vector<8x128xi1>, vector<8x128xf32>
    %cst_115 = arith.constant 0.000000e+00 : f32
    %390 = vector.shape_cast %381 : vector<8x1xi1> to vector<8x1xi1>
    %391 = vector.broadcast %390 : vector<8x1xi1> to vector<8x128xi1>
    %392 = vector.broadcast %cst_115 : f32 to vector<8x128xf32>
    %393 = arith.select %391, %379, %392 : vector<8x128xi1>, vector<8x128xf32>
    %394 = arith.truncf %393 : vector<8x128xf32> to vector<8x128xbf16>
    %c0_116 = arith.constant 0 : index
    %c0_117 = arith.constant 0 : index
    %395 = vector.load %arg7[%c0_116, %c0_117] : memref<32x128xbf16, #tpu.memory_space<vmem>>, vector<8x128xbf16>
    tpu.vector_store %arg7[%c0_116, %c0_117], %394 {strides = array<i32>} : memref<32x128xbf16, #tpu.memory_space<vmem>>, vector<8x128xbf16>,
    %c0_118 = arith.constant 0 : index
    %c0_119 = arith.constant 0 : index
    %396 = vector.load %arg8[%c0_118, %c0_119] : memref<8x128xf32, #tpu.memory_space<vmem>>, vector<8x128xf32>
    tpu.vector_store %arg8[%c0_118, %c0_119], %339 {strides = array<i32>} : memref<8x128xf32, #tpu.memory_space<vmem>>, vector<8x128xf32>,
    %c0_120 = arith.constant 0 : index
    %c0_121 = arith.constant 0 : index
    %397 = vector.load %arg9[%c0_120, %c0_121] : memref<8x128xf32, #tpu.memory_space<vmem>>, vector<8x128xf32>
    tpu.vector_store %arg9[%c0_120, %c0_121], %342 {strides = array<i32>} : memref<8x128xf32, #tpu.memory_space<vmem>>, vector<8x128xf32>,
    %c0_122 = arith.constant 0 : index
    %c0_123 = arith.constant 0 : index
    %398 = vector.load %arg10[%c0_122, %c0_123] : memref<8x128xf32, #tpu.memory_space<vmem>>, vector<8x128xf32>
    tpu.vector_store %arg10[%c0_122, %c0_123], %385 {strides = array<i32>} : memref<8x128xf32, #tpu.memory_space<vmem>>, vector<8x128xf32>,
    %c0_124 = arith.constant 0 : index
    %c0_125 = arith.constant 0 : index
    %399 = vector.load %arg11[%c0_124, %c0_125] : memref<8x128xf32, #tpu.memory_space<vmem>>, vector<8x128xf32>
    tpu.vector_store %arg11[%c0_124, %c0_125], %389 {strides = array<i32>} : memref<8x128xf32, #tpu.memory_space<vmem>>, vector<8x128xf32>,
    return
  }
  func.func @transform_0(%arg0: i32) -> (i32, i32) {
    %c0_i32 = arith.constant 0 : i32
    %c0_i32_0 = arith.constant 0 : i32
    return %arg0, %c0_i32 : i32, i32
  }
  func.func @transform_1(%arg0: i32) -> (i32, i32) {
    %c1_i32 = arith.constant 1 : i32
    %0 = arith.subi %c1_i32, %arg0 : i32
    %c0_i32 = arith.constant 0 : i32
    %c0_i32_0 = arith.constant 0 : i32
    return %0, %c0_i32 : i32, i32
  }
  func.func @transform_2(%arg0: i32) -> (i32, i32) {
    %c0_i32 = arith.constant 0 : i32
    %c0_i32_0 = arith.constant 0 : i32
    %c0_i32_1 = arith.constant 0 : i32
    return %c0_i32, %c0_i32_0 : i32, i32
  }
  func.func @transform_3(%arg0: i32) -> (i32, i32) {
    %c0_i32 = arith.constant 0 : i32
    %c0_i32_0 = arith.constant 0 : i32
    %c0_i32_1 = arith.constant 0 : i32
    return %c0_i32, %c0_i32_0 : i32, i32
  }
  func.func @transform_4(%arg0: i32) -> (i32, i32) {
    %c0_i32 = arith.constant 0 : i32
    %c0_i32_0 = arith.constant 0 : i32
    %c0_i32_1 = arith.constant 0 : i32
    return %c0_i32, %c0_i32_0 : i32, i32
  }
  func.func @transform_5(%arg0: i32) -> (i32, i32) {
    %c0_i32 = arith.constant 0 : i32
    %c0_i32_0 = arith.constant 0 : i32
    return %arg0, %c0_i32 : i32, i32
  }
  func.func @transform_6(%arg0: i32) -> (i32, i32) {
    %c1_i32 = arith.constant 1 : i32
    %0 = arith.subi %c1_i32, %arg0 : i32
    %c0_i32 = arith.constant 0 : i32
    %c0_i32_0 = arith.constant 0 : i32
    return %0, %c0_i32 : i32, i32
  }
}

</mosaic_0001>

<bundles_post_ra>
// kernel: run.1
= control target key start
LH: loop header
LB: loop body
LE: loop exit
PB: predicated region body
PF: predicated region fallthrough
CT: control target
= control target key end

     0   :  { %s3699_s21 = smov 0   ;;  %s4791_s0 = inlined_call_operand.vmem [shape: bf16[64,512], index: 0, kind: input, shape index: {}]   ;;  %s4792_s1 = inlined_call_operand.vmem [shape: bf16[64,512], index: 1, kind: input, shape index: {}]   ;;  %s4793_s2 = inlined_call_operand.vmem [shape: s32[8,1], index: 2, kind: input, shape index: {}]   ;;  %s4794_s3 = inlined_call_operand.vmem [shape: bf16[128,512], index: 3, kind: input, shape index: {}]   ;;  %s4795_s4 = inlined_call_operand.vmem [shape: bf16[128,512], index: 4, kind: input, shape index: {}]   ;;  %s4796_s5 = inlined_call_operand.vmem [shape: bf16[64,128], index: 5, kind: output, shape index: {0}]   ;;  %s4797_s6 = inlined_call_operand.vmem [shape: bf16[64,128], index: 6, kind: output, shape index: {1}]  }
   0x1 LB: > { %s3002_s22 = sadd.s32 4294967295, %s3660_s21   ;;  %p3006_p0 = scmp.ge.s32.totalorder %s3660_s21, 1  ;;  %s3660_s21 = sphi %s3699_s21, %s17_s21  }
   0x2   : > { %p235_p1 = scmp.lt.s32.totalorder %s3660_s21, 3 }
   0x4   : > { %p236_p2 = pnand %p3006_p0, %p235_p1 }
   0x6   : > { %239 = sbr.rel (%p236_p2) target bundleno = 1102 (0x44e), region = 40 }
   0xb   : > { %s3707_s23 = sshll.u32 %s3002_s22, 2  ;;  %s286_s24 = ssub.s32 1, %s3002_s22 }
   0xc   : > { %p280_p3 = scmp.lt.s32.totalorder %s3707_s23, 7  ;;  %s3710_s25 = sshll.u32 %s286_s24, 2 }
   0xd   : > { %p288_p4 = scmp.lt.s32.totalorder %s3710_s25, 7  ;;  %p3017_p5 = scmp.ne.s32.totalorder %s3002_s22, 0 }
   0xe   : > { %s281_s26 = scalar_select %p280_p3, %s3707_s23, 7 }
   0xf   : > { %s289_s27 = scalar_select %p288_p4, %s3710_s25, 7 }
  0x10   : > { %s3320_s28 = sshll.u32 %s281_s26, 4  ;;  %s3014_s29 = sshll.u32 %s281_s26, 2 }
  0x11   : > { %s3718_s8 = scalar_lea.vmem %s4791_s0, %s3320_s28  ;;  %s3321_s9 = sshll.u32 %s289_s27, 4 }
  0x12   : > { %s3723_s12 = scalar_lea.vmem %s4792_s1, %s3321_s9  ;;  %s3728_s15 = scalar_lea.vmem %s4796_s5, %s3014_s29 }
  0x13   : > { %s3016_s16 = sshll.u32 %s289_s27, 2  ;;  %313 = sbr.rel (%p3017_p5) target bundleno = 27 (0x1b), region = 44 }
  0x14   : > { %s3733_s19 = scalar_lea.vmem %s4797_s6, %s3016_s16 }
  0x18   : > { %v3662_v0 = vmov 0.0  }
  0x19   : > { %314 = vst [vmem:[#allocation2] sm:$0xff] %v3662_v0  ;;  %315 = vst [vmem:[#allocation3] sm:$0xff] %v3662_v0 }
  0x1a   : > { %316 = vst [vmem:[#allocation4] sm:$0xff] %v3662_v0  ;;  %317 = vst [vmem:[#allocation5] sm:$0xff] %v3662_v0 }
  0x1b PF: > { %v3738_v1 = vld [vmem:[%s4794_s3 + $0xe4] ss:$16 sps:$4 sm:$0xff]   ;;  %v3743_v2 = vld [vmem:[%s4794_s3 + $0xe0] ss:$16 sps:$4 sm:$0xff]   ;;  %v4801_v3 = vmov 0   ;;  %s326_s13 = sadd.s32 3, %s3710_s25  ;;  %v636_v47 = vstv %s3707_s23 }
  0x1c   : > { %558 = vmatprep.mubr.bf16.mxu0 %v4801_v3  ;;  %599 = vmatprep.mubr.bf16.mxu1 %v4801_v3  ;;  %v3751_v4 = vld [vmem:[%s4794_s3 + $0xc4] ss:$16 sps:$4 sm:$0xff]   ;;  %v3758_v5 = vld [vmem:[%s4794_s3 + $0xc0] ss:$16 sps:$4 sm:$0xff]   ;;  %v3770_v7 = vld [vmem:[%s4794_s3 + $0xec] ss:$16 sps:$4 sm:$0xff]   ;;  %v957_v50 = vstv %s326_s13 }
  0x1d   : > { %526 = vmatprep.subr.bf16.mxu0 %v3738_v1  ;;  %3332 = vset.pattern.permute.xlu0 %v4801_v3  ;;  %v3765_v6 = vld [vmem:[%s4794_s3 + $0xa4] ss:$16 sps:$4 sm:$0xff]   ;;  %v3775_v8 = vld [vmem:[%s4794_s3 + $0xe8] ss:$16 sps:$4 sm:$0xff]   ;;  %v3781_v9 = vld [vmem:[%s4794_s3 + $0xa0] ss:$16 sps:$4 sm:$0xff]  }
  0x1e   : > { %527 = vmatpush1.bf16.msra.mxu0 %v3743_v2  ;;  %3333 = vset.pattern.permute.xlu1 %v4801_v3  ;;  %v3788_v10 = vld [vmem:[%s4794_s3 + $0x84] ss:$16 sps:$4 sm:$0xff]   ;;  %v3794_v11 = vld [vmem:[%s4794_s3 + $0xcc] ss:$16 sps:$4 sm:$0xff]   ;;  %v3799_v12 = vld [vmem:[%s4794_s3 + $0xc8] ss:$16 sps:$4 sm:$0xff]  }
  0x1f   : > { %528 = vmatprep.subr.bf16.mxu0 %v3751_v4  ;;  %567 = vmatprep.subr.bf16.mxu1 %v3770_v7  ;;  %v3806_v13 = vld [vmem:[%s4794_s3 + $0x80] ss:$16 sps:$4 sm:$0xff]   ;;  %v3811_v14 = vld [vmem:[%s4794_s3 + $0x64] ss:$16 sps:$4 sm:$0xff]   ;;  %v3816_v15 = vld [vmem:[%s4794_s3 + $0xac] ss:$16 sps:$4 sm:$0xff]  }
  0x20   : > { %568 = vmatpush1.bf16.msra.mxu1 %v3775_v8  ;;  %v3823_v16 = vld [vmem:[%s4794_s3 + $0xa8] ss:$16 sps:$4 sm:$0xff]   ;;  %v3829_v17 = vld [vmem:[%s4794_s3 + $0x8c] ss:$16 sps:$4 sm:$0xff]   ;;  %v3835_v18 = vld [vmem:[%s4794_s3 + $0x60] ss:$16 sps:$4 sm:$0xff]  }
  0x21   : > { %569 = vmatprep.subr.bf16.mxu1 %v3794_v11  ;;  %v3841_v19 = vld [vmem:[%s4794_s3 + $0x44] ss:$16 sps:$4 sm:$0xff]   ;;  %v3847_v20 = vld [vmem:[%s4794_s3 + $0x88] ss:$16 sps:$4 sm:$0xff]   ;;  %v3853_v21 = vld [vmem:[%s4794_s3 + $0x6c] ss:$16 sps:$4 sm:$0xff]  }
  0x22   : > { %529 = vmatpush1.bf16.msra.mxu0 %v3758_v5  ;;  %v3859_v22 = vld [vmem:[%s4794_s3 + $0x40] ss:$16 sps:$4 sm:$0xff]   ;;  %v3864_v23 = vld [vmem:[%s4794_s3 + $0x24] ss:$16 sps:$4 sm:$0xff]   ;;  %v3871_v24 = vld [vmem:[%s4794_s3 + $0x68] ss:$16 sps:$4 sm:$0xff]  }
  0x23   : > { %530 = vmatprep.subr.bf16.mxu0 %v3765_v6  ;;  %v3877_v25 = vld [vmem:[%s4794_s3 + $0x4c] ss:$16 sps:$4 sm:$0xff]   ;;  %v3882_v26 = vld [vmem:[%s4794_s3 + $0x20] ss:$16 sps:$4 sm:$0xff]   ;;  %v3888_v27 = vld [vmem:[%s4794_s3 + $0x4] ss:$16 sps:$4 sm:$0xff]  }
  0x24   : > { %570 = vmatpush1.bf16.msra.mxu1 %v3799_v12  ;;  %v3895_v28 = vld [vmem:[%s4794_s3 + $0x48] ss:$16 sps:$4 sm:$0xff]   ;;  %v3901_v29 = vld [vmem:[%s4794_s3 + $0x2c] ss:$16 sps:$4 sm:$0xff]   ;;  %v3906_v30 = vld [vmem:[%s4794_s3] ss:$16 sps:$4 sm:$0xff]  }
  0x25   : > { %571 = vmatprep.subr.bf16.mxu1 %v3816_v15  ;;  %v3908_v31 = vld [vmem:[#allocation2] sm:$0xff]  ;;  %v3921_v33 = vld [vmem:[%s4794_s3 + $0x28] ss:$16 sps:$4 sm:$0xff]   ;;  %v3927_v34 = vld [vmem:[%s4794_s3 + $0xc] ss:$16 sps:$4 sm:$0xff]   ;;  %s1610_s7 = sadd.s32 2, %s3707_s23 }
  0x26   : > { %531 = vmatpush1.bf16.msra.mxu0 %v3781_v9  ;;  %v3914_v32 = vld [vmem:[%s4795_s4 + $0xe4] ss:$16 sps:$4 sm:$0xff]   ;;  %v333_v35 = vpack.c.bf16 %v3908_v31, %v3908_v31  ;;  %v3934_v36 = vld [vmem:[%s4795_s4 + $0xe0] ss:$16 sps:$4 sm:$0xff]   ;;  %v3947_v38 = vld [vmem:[%s4794_s3 + $0x8] ss:$16 sps:$4 sm:$0xff]   ;;  %v1921_v57 = vstv %s1610_s7 }
  0x27   : > { %532 = vmatprep.subr.bf16.mxu0 %v3788_v10  ;;  %v3940_v37 = vld [vmem:[%s4795_s4 + $0xc4] ss:$16 sps:$4 sm:$0xff]   ;;  %v3953_v39 = vld [vmem:[%s4795_s4 + $0xec] ss:$16 sps:$4 sm:$0xff]   ;;  %v3958_v40 = vld [vmem:[%s4795_s4 + $0xc0] ss:$16 sps:$4 sm:$0xff]  }
  0x28   : > { %572 = vmatpush1.bf16.msra.mxu1 %v3823_v16  ;;  %v3964_v41 = vld [vmem:[%s4795_s4 + $0xa4] ss:$16 sps:$4 sm:$0xff]   ;;  %v3972_v42 = vld [vmem:[%s4795_s4 + $0xe8] ss:$16 sps:$4 sm:$0xff]   ;;  %v3978_v43 = vld [vmem:[%s4795_s4 + $0xcc] ss:$16 sps:$4 sm:$0xff]  }
  0x29   : > { %573 = vmatprep.subr.bf16.mxu1 %v3829_v17  ;;  %v3985_v44 = vld [vmem:[%s4795_s4 + $0xa0] ss:$16 sps:$4 sm:$0xff]   ;;  %v3991_v45 = vld [vmem:[%s4795_s4 + $0x84] ss:$16 sps:$4 sm:$0xff]   ;;  %v3997_v46 = vld [vmem:[%s4795_s4 + $0xc8] ss:$16 sps:$4 sm:$0xff]  }
  0x2a   : > { %533 = vmatpush1.bf16.msra.mxu0 %v3806_v13  ;;  %v4003_v48 = vld [vmem:[%s4795_s4 + $0x80] ss:$16 sps:$4 sm:$0xff]   ;;  %v4009_v49 = vld [vmem:[%s4795_s4 + $0xac] ss:$16 sps:$4 sm:$0xff]   ;;  %v4015_v51 = vld [vmem:[%s4795_s4 + $0x64] ss:$16 sps:$4 sm:$0xff]  }
  0x2b   : > { %534 = vmatprep.subr.bf16.mxu0 %v3811_v14  ;;  %v4022_v52 = vld [vmem:[%s4795_s4 + $0xa8] ss:$16 sps:$4 sm:$0xff]   ;;  %v4027_v53 = vld [vmem:[%s4795_s4 + $0x8c] ss:$16 sps:$4 sm:$0xff]   ;;  %v4032_v54 = vld [vmem:[%s4793_s2] sm:$0xff]  ;;  %s2252_s22 = sadd.s32 3, %s3707_s23 }
  0x2c   : > { %574 = vmatpush1.bf16.msra.mxu1 %v3847_v20  ;;  %vm637_vm0 = vcmp.gt.s32.totalorder %v4032_v54, %v636_v47  ;;  %vm958_vm1 = vcmp.gt.s32.totalorder %v4032_v54, %v957_v50  ;;  %v4041_v55 = vld [vmem:[%s4795_s4 + $0x60] ss:$16 sps:$4 sm:$0xff]   ;;  %v4048_v58 = vld [vmem:[%s4795_s4 + $0x44] ss:$16 sps:$4 sm:$0xff]   ;;  %v4053_v59 = vld [vmem:[%s4795_s4 + $0x88] ss:$16 sps:$4 sm:$0xff]   ;;  %vm1922_vm2 = vcmp.gt.s32.totalorder %v4032_v54, %v1921_v57  ;;  %v2562_v63 = vstv %s2252_s22 }
  0x2d   : > { %575 = vmatprep.subr.bf16.mxu1 %v3853_v21  ;;  %4816 = vst [vmem:[#allocation6_spill] sm:$0xff] %v4041_v55  ;;  %v638_v56 = vsel %vm637_vm0, 1, %v4801_v3  ;;  %4817 = vst [vmem:[#allocation7_spill] sm:$0xff] %v4048_v58  ;;  %v4060_v60 = vld [vmem:[%s4795_s4 + $0x6c] ss:$16 sps:$4 sm:$0xff]   ;;  %v959_v61 = vsel %vm958_vm1, 1, %v4801_v3  ;;  %vm2563_vm3 = vcmp.gt.s32.totalorder %v4032_v54, %v2562_v63 }
  0x2e   : > { %535 = vmatpush1.bf16.msra.mxu0 %v3835_v18  ;;  %640 = vperm.xlu0 %3332, %v638_v56   ;;  %4818 = vst [vmem:[#allocation8_spill] sm:$0xff] %v4060_v60  ;;  %v4069_v62 = vld [vmem:[%s4795_s4 + $0x40] ss:$16 sps:$4 sm:$0xff]   ;;  %v4075_v0 = vld [vmem:[%s4795_s4 + $0x24] ss:$16 sps:$4 sm:$0xff]   ;;  %v1923_v50 = vsel %vm1922_vm2, 1, %v4801_v3 }
  0x2f   : > { %536 = vmatprep.subr.bf16.mxu0 %v3841_v19  ;;  %4819 = vst [vmem:[#allocation9_spill] sm:$0xff] %v4069_v62  ;;  %4820 = vst [vmem:[#allocation10_spill] sm:$0xff] %v4075_v0  ;;  %v4086_v47 = vld [vmem:[%s4795_s4 + $0x4c] ss:$16 sps:$4 sm:$0xff]   ;;  %v4095_v56 = vld [vmem:[%s4795_s4 + $0x20] ss:$16 sps:$4 sm:$0xff]  }
  0x30   : > { %576 = vmatpush1.bf16.msra.mxu1 %v3871_v24  ;;  %v4101_v57 = vld [vmem:[%s4795_s4 + $0x4] ss:$16 sps:$4 sm:$0xff]   ;;  %v4112_v63 = vld [vmem:[%s4795_s4 + $0x2c] ss:$16 sps:$4 sm:$0xff]   ;;  %s968_s16 = sadd.s32 1, %s3707_s23  ;;  %s969_s17 = sadd.s32 2, %s3710_s25 }
  0x31   : > { %577 = vmatprep.subr.bf16.mxu1 %v3877_v25  ;;  %s1611_s18 = sadd.s32 1, %s3710_s25 }
  0x32   : > { %537 = vmatpush1.bf16.msra.mxu0 %v3859_v22  ;;  %961 = vperm.xlu0 %3332, %v959_v61   ;;  %v4106_v61 = vld [vmem:[%s4795_s4 + $0x48] ss:$16 sps:$4 sm:$0xff]  }
  0x33   : > { %538 = vmatprep.subr.bf16.mxu0 %v3864_v23 }
  0x34   : > { %578 = vmatpush1.bf16.msra.mxu1 %v3895_v28 }
  0x35   : > { %579 = vmatprep.subr.bf16.mxu1 %v3901_v29 }
  0x36   : > { %539 = vmatpush1.bf16.msra.mxu0 %v3882_v26  ;;  %1925 = vperm.xlu0 %3332, %v1923_v50   ;;  %v4126_v50 = vld [vmem:[%s4795_s4 + $0x28] ss:$16 sps:$4 sm:$0xff]  }
  0x37   : > { %540 = vmatprep.subr.bf16.mxu0 %v3888_v27 }
  0x38   : > { %580 = vmatpush1.bf16.msra.mxu1 %v3921_v33 }
  0x39   : > { %581 = vmatprep.subr.bf16.mxu1 %v3927_v34 }
  0x3a   : > { %541 = vmatpush1.bf16.msra.mxu0 %v3906_v30 }
  0x3b   : > { %847 = vmatprep.subr.bf16.mxu0 %v3914_v32 }
  0x3c   : > { %582 = vmatpush1.bf16.msra.mxu1 %v3947_v38 }
  0x3d   : > { %559 = vmatmul.mubr.bf16.vlgmr.msra.gmra.mxu0 %v333_v35  ;;  %888 = vmatprep.subr.bf16.mxu1 %v3953_v39 }
  0x3e   : > { %848 = vmatpush1.bf16.msra.mxu0 %v3934_v36  ;;  %879 = vmatprep.mubr.bf16.mxu0 %v4801_v3 }
  0x3f   : > { %849 = vmatprep.subr.bf16.mxu0 %v3940_v37  ;;  %600 = vmatmul.mubr.bf16.vlgmr.msra.gmra.mxu1 %v333_v35  ;;  %v4080_v35 = vld [vmem:[%s4795_s4 + $0x68] ss:$16 sps:$4 sm:$0xff]  }
  0x40   : > { %889 = vmatpush1.bf16.msra.mxu1 %v3972_v42  ;;  %920 = vmatprep.mubr.bf16.mxu1 %v4801_v3 }
  0x41   : > { %890 = vmatprep.subr.bf16.mxu1 %v3978_v43 }
  0x42   : > { %850 = vmatpush1.bf16.msra.mxu0 %v3958_v40 }
  0x43   : > { %851 = vmatprep.subr.bf16.mxu0 %v3964_v41 }
  0x44   : > { %891 = vmatpush1.bf16.msra.mxu1 %v3997_v46 }
  0x45   : > { %892 = vmatprep.subr.bf16.mxu1 %v4009_v49 }
  0x46   : > { %852 = vmatpush1.bf16.msra.mxu0 %v3985_v44 }
  0x47   : > { %853 = vmatprep.subr.bf16.mxu0 %v3991_v45 }
  0x48   : > { %893 = vmatpush1.bf16.msra.mxu1 %v4022_v52 }
  0x49   : > { %894 = vmatprep.subr.bf16.mxu1 %v4027_v53 }
  0x4a   : > { %854 = vmatpush1.bf16.msra.mxu0 %v4003_v48 }
  0x4b   : > { %855 = vmatprep.subr.bf16.mxu0 %v4015_v51 }
  0x4c   : > { %895 = vmatpush1.bf16.msra.mxu1 %v4053_v59 }
  0x4d   : > { %896 = vmatprep.subr.bf16.mxu1 %v4060_v60  ;;  %v321_v60 = vld [vmem:[#allocation4] sm:$0xff] }
  0x4e   : > { %856 = vmatpush1.bf16.msra.mxu0 %v4041_v55  ;;  %v4120_v55 = vld [vmem:[%s4795_s4] ss:$16 sps:$4 sm:$0xff]  }
  0x4f   : > { %857 = vmatprep.subr.bf16.mxu0 %v4048_v58  ;;  %v2564_v58 = vsel %vm2563_vm3, 1, %v4801_v3  ;;  %v4132_v3 = vld [vmem:[%s4795_s4 + $0xc] ss:$16 sps:$4 sm:$0xff]  }
  0x50   : > { %897 = vmatpush1.bf16.msra.mxu1 %v4080_v35  ;;  %2566 = vperm.xlu0 %3332, %v2564_v58   ;;  %v4821_v58 = vmov 0  }
  0x51   : > { %898 = vmatprep.subr.bf16.mxu1 %v4086_v47 }
  0x52   : > { %858 = vmatpush1.bf16.msra.mxu0 %v4069_v62  ;;  %v4140_v62 = vld [vmem:[%s4795_s4 + $0x8] ss:$16 sps:$4 sm:$0xff]  }
  0x53   : > { %859 = vmatprep.subr.bf16.mxu0 %v4075_v0  ;;  %v654_v0 = vpack.c.bf16 %v321_v60, %v321_v60 }
  0x54   : > { %899 = vmatpush1.bf16.msra.mxu1 %v4106_v61 }
  0x55   : > { %900 = vmatprep.subr.bf16.mxu1 %v4112_v63 }
  0x56   : > { %860 = vmatpush1.bf16.msra.mxu0 %v4095_v56 }
  0x57   : > { %861 = vmatprep.subr.bf16.mxu0 %v4101_v57 }
  0x58   : > { %901 = vmatpush1.bf16.msra.mxu1 %v4126_v50 }
  0x59   : > { %902 = vmatprep.subr.bf16.mxu1 %v4132_v3 }
  0x5a   : > { %862 = vmatpush1.bf16.msra.mxu0 %v4120_v55 }
  0x5b   : > { %1169 = vmatprep.subr.bf16.mxu0 %v3738_v1  ;;  %v1279_v1 = vstv %s968_s16 }
  0x5c   : > { %903 = vmatpush1.bf16.msra.mxu1 %v4140_v62  ;;  %vm1280_vm4 = vcmp.gt.s32.totalorder %v4032_v54, %v1279_v1 }
  0x5d   : > { %880 = vmatmul.mubr.bf16.vlgmr.msra.gmra.mxu0 %v654_v0  ;;  %1210 = vmatprep.subr.bf16.mxu1 %v3770_v7  ;;  %v2882_v7 = vstv %s3710_s25 }
  0x5e   : > { %1170 = vmatpush1.bf16.msra.mxu0 %v3743_v2  ;;  %1201 = vmatprep.mubr.bf16.mxu0 %v4821_v58  ;;  %v1599_v2 = vstv %s969_s17  ;;  %vm2883_vm7 = vcmp.gt.s32.totalorder %v4032_v54, %v2882_v7  ;;  %v320_v7 = vld [vmem:[#allocation3] sm:$0xff] }
  0x5f   : > { %1171 = vmatprep.subr.bf16.mxu0 %v3751_v4  ;;  %921 = vmatmul.mubr.bf16.vlgmr.msra.gmra.mxu1 %v654_v0  ;;  %vm1600_vm5 = vcmp.gt.s32.totalorder %v4032_v54, %v1599_v2  ;;  %v1281_v4 = vsel %vm1280_vm4, 1, %v4821_v58 }
  0x60   : > { %1211 = vmatpush1.bf16.msra.mxu1 %v3775_v8  ;;  %1242 = vmatprep.mubr.bf16.mxu1 %v4821_v58 }
  0x61   : > { %1212 = vmatprep.subr.bf16.mxu1 %v3794_v11  ;;  %1283 = vperm.xlu1 %3333, %v1281_v4  }
  0x62   : > { %1172 = vmatpush1.bf16.msra.mxu0 %v3758_v5  ;;  %v2241_v5 = vstv %s1611_s18 }
  0x63   : > { %1173 = vmatprep.subr.bf16.mxu0 %v3765_v6  ;;  %v1601_v6 = vsel %vm1600_vm5, 1, %v4821_v58  ;;  %vm2242_vm6 = vcmp.gt.s32.totalorder %v4032_v54, %v2241_v5 }
  0x64   : > { %1213 = vmatpush1.bf16.msra.mxu1 %v3799_v12  ;;  %v2243_v8 = vsel %vm2242_vm6, 1, %v4821_v58 }
  0x65   : > { %1214 = vmatprep.subr.bf16.mxu1 %v3816_v15  ;;  %1603 = vperm.xlu1 %3333, %v1601_v6  }
  0x66   : > { %1174 = vmatpush1.bf16.msra.mxu0 %v3781_v9  ;;  %v2884_v9 = vsel %vm2883_vm7, 1, %v4821_v58 }
  0x67   : > { %1175 = vmatprep.subr.bf16.mxu0 %v3788_v10  ;;  %v327_v10 = vld [vmem:[%s3718_s8] sm:$0xff] }
  0x68   : > { %1215 = vmatpush1.bf16.msra.mxu1 %v3823_v16  ;;  %v329_v11 = vunpack.c.l.bf16 %v327_v10  ;;  %v330_v12 = vunpack.c.h.bf16 %v327_v10 }
  0x69   : > { %1216 = vmatprep.subr.bf16.mxu1 %v3829_v17  ;;  %2245 = vperm.xlu1 %3333, %v2243_v8  }
  0x6a   : > { %1176 = vmatpush1.bf16.msra.mxu0 %v3806_v13 }
  0x6b   : > { %1177 = vmatprep.subr.bf16.mxu0 %v3811_v14 }
  0x6c   : > { %1217 = vmatpush1.bf16.msra.mxu1 %v3847_v20  ;;  %v328_v20 = vld [vmem:[%s3718_s8 + $0x8] sm:$0xff] }
  0x6d   : > { %1218 = vmatprep.subr.bf16.mxu1 %v3853_v21  ;;  %2886 = vperm.xlu1 %3333, %v2884_v9  }
  0x6e   : > { %1178 = vmatpush1.bf16.msra.mxu0 %v3835_v18 }
  0x6f   : > { %1179 = vmatprep.subr.bf16.mxu0 %v3841_v19 }
  0x70   : > { %1219 = vmatpush1.bf16.msra.mxu1 %v3871_v24  ;;  %v332_v24 = vunpack.c.h.bf16 %v328_v20 }
  0x71   : > { %1220 = vmatprep.subr.bf16.mxu1 %v3877_v25 }
  0x72   : > { %1180 = vmatpush1.bf16.msra.mxu0 %v3859_v22 }
  0x73   : > { %1181 = vmatprep.subr.bf16.mxu0 %v3864_v23 }
  0x74   : > { %1221 = vmatpush1.bf16.msra.mxu1 %v3895_v28 }
  0x75   : > { %1222 = vmatprep.subr.bf16.mxu1 %v3901_v29 }
  0x76   : > { %1182 = vmatpush1.bf16.msra.mxu0 %v3882_v26  ;;  %v331_v26 = vunpack.c.l.bf16 %v328_v20 }
  0x77   : > { %1183 = vmatprep.subr.bf16.mxu0 %v3888_v27 }
  0x78   : > { %1223 = vmatpush1.bf16.msra.mxu1 %v3921_v33 }
  0x79   : > { %1224 = vmatprep.subr.bf16.mxu1 %v3927_v34 }
  0x7a   : > { %1184 = vmatpush1.bf16.msra.mxu0 %v3906_v30 }
  0x7b   : > { %1489 = vmatprep.subr.bf16.mxu0 %v3914_v32 }
  0x7c   : > { %1225 = vmatpush1.bf16.msra.mxu1 %v3947_v38 }
  0x7d   : > { %1530 = vmatprep.subr.bf16.mxu1 %v3953_v39  ;;  %v648_v39 = vld [vmem:[%s3723_s12 + $0x30] sm:$0xff] }
  0x7e   : > { %v650_v54 = vunpack.c.l.bf16 %v648_v39  ;;  %v651_v60 = vunpack.c.h.bf16 %v648_v39 }
  0xa9   : > { %v641_v10 = vpop.permute.xlu0 %640 }
  0xaa   : > { %vm642_vm8 = vcmp.eq.s32.totalorder %v641_v10, 1  ;;  %v4321_v10 = vld [vmem:[%s4794_s3 + $0xa8] ss:$16 sps:$4 sm:$0xff]  }
  0xfd   : > { %v560_v13 = vpop.f32.mrf.mxu0 }
  0xfe   : > { %v608_v14 = vadd.f32 %v560_v13, %v329_v11 }
  0xff   : > { %v562_v15 = vpop.f32.mrf.mxu0  ;;  %v601_v21 = vpop.f32.mrf.mxu1 }
 0x100   : > { %v3052_v16 = vmul.f32 -1.442695, %v608_v14  ;;  %v609_v17 = vadd.f32 %v562_v15, %v330_v12  ;;  %v610_v29 = vadd.f32 %v601_v21, %v331_v26  ;;  %v649_v14 = vld [vmem:[%s3723_s12 + $0x38] sm:$0xff] }
 0x101   : > { %v564_v18 = vpop.f32.mrf.mxu0  ;;  %v603_v23 = vpop.f32.mrf.mxu1  ;;  %v653_v21 = vunpack.c.h.bf16 %v649_v14 }
 0x102   : > { %3526 = vpow2.f32 %v3052_v16  ;;  %v3053_v19 = vmul.f32 -1.442695, %v609_v17  ;;  %v611_v28 = vadd.f32 %v603_v23, %v332_v24 }
 0x103   : > { %v565_v22 = vpop.f32.mrf.mxu0  ;;  %v605_v25 = vpop.f32.mrf.mxu1 }
 0x104   : > { %3528 = vpow2.f32 %v3053_v19  ;;  %v3054_v30 = vmul.f32 -1.442695, %v611_v28  ;;  %v652_v25 = vunpack.c.l.bf16 %v649_v14  ;;  %v4345_v14 = vld [vmem:[%s4794_s3 + $0x88] ss:$16 sps:$4 sm:$0xff]  }
 0x105   : > { %v606_v27 = vpop.f32.mrf.mxu1  ;;  %3530 = vtanh.f32 %v610_v29 }
 0x106   : > { %3532 = vpow2.f32 %v3054_v30 }
 0x10f   : > { %v3527_v32 = vpop.eup %3526 }
 0x110   : > { %v615_v33 = vadd.f32 1.0, %v3527_v32 }
 0x111   : > { %v3529_v34 = vpop.eup %3528 }
 0x112   : > { %3534 = vrcp.f32 %v615_v33  ;;  %v621_v38 = vadd.f32 1.0, %v3529_v34  ;;  %v3531_v0 = vpop.eup %3530 }
 0x113   : > { %v3533_v2 = vpop.eup %3532 }
 0x114   : > { %3536 = vrcp.f32 %v621_v38  ;;  %v628_v12 = vadd.f32 1.0, %v3533_v2 }
 0x11d   : > { %v881_v1 = vpop.f32.mrf.mxu0 }
 0x11e   : > { %v929_v4 = vadd.f32 %v881_v1, %v650_v54 }
 0x11f   : > { %v3535_v5 = vpop.eup %3534  ;;  %v883_v6 = vpop.f32.mrf.mxu0 }
 0x120   : > { %v3087_v8 = vmul.f32 -1.442695, %v929_v4  ;;  %v930_v9 = vadd.f32 %v883_v6, %v651_v60  ;;  %v632_v17 = vmul.f32 %v3535_v5, %v3531_v0  ;;  %v922_v18 = vpop.f32.mrf.mxu1  ;;  %v322_v6 = vld [vmem:[#allocation5] sm:$0xff] }
 0x121   : > { %v3537_v11 = vpop.eup %3536  ;;  %v885_v13 = vpop.f32.mrf.mxu0  ;;  %v931_v28 = vadd.f32 %v922_v18, %v652_v25  ;;  %v4369_v18 = vld [vmem:[%s4794_s3 + $0x68] ss:$16 sps:$4 sm:$0xff]   ;;  %v4407_v25 = vld [vmem:[%s4794_s3 + $0x2c] ss:$16 sps:$4 sm:$0xff]  }
 0x122   : > { %3538 = vpow2.f32 %v3087_v8  ;;  %v3088_v15 = vmul.f32 -1.442695, %v930_v9  ;;  %v631_v16 = vmul.f32 %v3537_v11, %v320_v7  ;;  %v924_v22 = vpop.f32.mrf.mxu1  ;;  %v4311_v8 = vld [vmem:[%s4794_s3 + $0xac] ss:$16 sps:$4 sm:$0xff]   ;;  %v4316_v9 = vld [vmem:[%s4794_s3 + $0xa0] ss:$16 sps:$4 sm:$0xff]  }
 0x123   : > { %v886_v19 = vpop.f32.mrf.mxu0  ;;  %v932_v26 = vadd.f32 %v924_v22, %v653_v21  ;;  %v4330_v11 = vld [vmem:[%s4794_s3 + $0x84] ss:$16 sps:$4 sm:$0xff]   ;;  %v4340_v13 = vld [vmem:[%s4794_s3 + $0x80] ss:$16 sps:$4 sm:$0xff]   ;;  %v4393_v22 = vld [vmem:[%s4794_s3 + $0x48] ss:$16 sps:$4 sm:$0xff]  }
 0x124   : > { %3540 = vpow2.f32 %v3088_v15  ;;  %v633_v20 = vadd.f32 %v632_v17, %v631_v16  ;;  %v926_v24 = vpop.f32.mrf.mxu1  ;;  %v4354_v15 = vld [vmem:[%s4794_s3 + $0x64] ss:$16 sps:$4 sm:$0xff]   ;;  %v4359_v16 = vld [vmem:[%s4794_s3 + $0x6c] ss:$16 sps:$4 sm:$0xff]   ;;  %v4364_v17 = vld [vmem:[%s4794_s3 + $0x60] ss:$16 sps:$4 sm:$0xff]  }
 0x125   : > { %3542 = vrcp.f32 %v628_v12  ;;  %v3089_v29 = vmul.f32 -1.442695, %v932_v26  ;;  %v4335_v12 = vld [vmem:[%s4794_s3 + $0x8c] ss:$16 sps:$4 sm:$0xff]   ;;  %v4378_v19 = vld [vmem:[%s4794_s3 + $0x44] ss:$16 sps:$4 sm:$0xff]  }
 0x126   : > { %3544 = vtanh.f32 %v633_v20  ;;  %v4199_v23 = vsel %vm642_vm8, %v633_v20, %v320_v7  ;;  %v927_v27 = vpop.f32.mrf.mxu1  ;;  %v4306_v7 = vld [vmem:[%s4794_s3 + $0xa4] ss:$16 sps:$4 sm:$0xff]   ;;  %v4383_v20 = vld [vmem:[%s4794_s3 + $0x4c] ss:$16 sps:$4 sm:$0xff]   ;;  %v4388_v21 = vld [vmem:[%s4794_s3 + $0x40] ss:$16 sps:$4 sm:$0xff]  }
 0x127   : > { %3546 = vtanh.f32 %v931_v28  ;;  %v4402_v24 = vld [vmem:[%s4794_s3 + $0x24] ss:$16 sps:$4 sm:$0xff]   ;;  %v4412_v26 = vld [vmem:[%s4794_s3 + $0x20] ss:$16 sps:$4 sm:$0xff]   ;;  %v4417_v27 = vld [vmem:[%s4794_s3 + $0x28] ss:$16 sps:$4 sm:$0xff]  }
 0x128   : > { %3548 = vpow2.f32 %v3089_v29  ;;  %v4426_v28 = vld [vmem:[%s4794_s3 + $0x4] ss:$16 sps:$4 sm:$0xff]   ;;  %v4431_v29 = vld [vmem:[%s4794_s3 + $0xc] ss:$16 sps:$4 sm:$0xff]  }
 0x12f   : > { %v3539_v30 = vpop.eup %3538 }
 0x130   : > { %v936_v32 = vadd.f32 1.0, %v3539_v30  ;;  %v4436_v30 = vld [vmem:[%s4794_s3] ss:$16 sps:$4 sm:$0xff]  }
 0x131   : > { %v3541_v33 = vpop.eup %3540 }
 0x132   : > { %v3543_v34 = vpop.eup %3542  ;;  %3550 = vrcp.f32 %v936_v32  ;;  %v942_v38 = vadd.f32 1.0, %v3541_v33  ;;  %v4441_v32 = vld [vmem:[%s4794_s3 + $0x8] ss:$16 sps:$4 sm:$0xff]   ;;  %v4450_v33 = vld [vmem:[%s4795_s4 + $0xe4] ss:$16 sps:$4 sm:$0xff]  }
 0x133   : > { %v3545_v39 = vpop.eup %3544 }
 0x134   : > { %3552 = vrcp.f32 %v942_v38  ;;  %v635_v54 = vmul.f32 %v3545_v39, %v3543_v34  ;;  %v3547_v4 = vpop.eup %3546  ;;  %v4455_v34 = vld [vmem:[%s4795_s4 + $0xec] ss:$16 sps:$4 sm:$0xff]   ;;  %v970_v38 = vld [vmem:[%s3718_s8 + $0x10] sm:$0xff] }
 0x135   : > { %v972_v39 = vunpack.c.l.bf16 %v970_v38 }
 0x136   : > { %v4203_v60 = vsel %vm642_vm8, %v635_v54, %v3908_v31  ;;  %v645_v0 = vsel %vm642_vm8, %v635_v54, 0.0  ;;  %v3549_v31 = vpop.eup %3548  ;;  %v973_v54 = vunpack.c.h.bf16 %v970_v38  ;;  %v1291_v38 = vld [vmem:[%s3723_s12 + $0x20] sm:$0xff] }
 0x137   : > { %v646_v1 = vpack.c.bf16 %v645_v0, %v645_v0  ;;  %v976_v2 = vpack.c.bf16 %v4203_v60, %v4203_v60 }
 0x139   : > { %647 = vst [vmem:[%s3728_s15] sm:$0xf] %v646_v1  ;;  %1202 = vmatmul.mubr.bf16.vlgmr.msra.gmra.mxu0 %v976_v2  ;;  %1243 = vmatmul.mubr.bf16.vlgmr.msra.gmra.mxu1 %v976_v2 }
 0x13a   : > { %1490 = vmatpush1.bf16.msra.mxu0 %v3934_v36  ;;  %1531 = vmatpush1.bf16.msra.mxu1 %v3972_v42 }
 0x13b   : > { %1491 = vmatprep.subr.bf16.mxu0 %v3940_v37  ;;  %1532 = vmatprep.subr.bf16.mxu1 %v3978_v43  ;;  %v949_v37 = vadd.f32 1.0, %v3549_v31 }
 0x13c   : > { %1521 = vmatprep.mubr.bf16.mxu0 %v4821_v58  ;;  %1562 = vmatprep.mubr.bf16.mxu1 %v4821_v58 }
 0x13d   : > { %3554 = vrcp.f32 %v949_v37 }
 0x13e   : > { %1492 = vmatpush1.bf16.msra.mxu0 %v3958_v40  ;;  %1533 = vmatpush1.bf16.msra.mxu1 %v3997_v46  ;;  %v4825_v46 = vld [vmem:[#allocation9_spill] sm:$0xff] }
 0x13f   : > { %v3551_v5 = vpop.eup %3550  ;;  %1493 = vmatprep.subr.bf16.mxu0 %v3964_v41  ;;  %1534 = vmatprep.subr.bf16.mxu1 %v4009_v49  ;;  %v4822_v41 = vld [vmem:[#allocation8_spill] sm:$0xff]  ;;  %v4826_v49 = vld [vmem:[#allocation10_spill] sm:$0xff] }
 0x140   : > { %v953_v36 = vmul.f32 %v3551_v5, %v3547_v4 }
 0x141   : > { %v3553_v42 = vpop.eup %3552 }
 0x142   : > { %v952_v43 = vmul.f32 %v3553_v42, %v322_v6  ;;  %1494 = vmatpush1.bf16.msra.mxu0 %v3985_v44  ;;  %1535 = vmatpush1.bf16.msra.mxu1 %v4022_v52  ;;  %v4823_v44 = vld [vmem:[#allocation6_spill] sm:$0xff]  ;;  %v4242_v52 = vpop.permute.xlu0 %961 }
 0x143   : > { %1495 = vmatprep.subr.bf16.mxu0 %v3991_v45  ;;  %1536 = vmatprep.subr.bf16.mxu1 %v4027_v53  ;;  %v4824_v45 = vld [vmem:[#allocation7_spill] sm:$0xff]  ;;  %vm963_vm9 = vcmp.eq.s32.totalorder %v4242_v52, 1 }
 0x144   : > { %v4223_v40 = vadd.f32 %v953_v36, %v952_v43  ;;  %vm3157_vm10 = vmpackc.low %vm963_vm9, %vm963_vm9  ;;  %v4571_v52 = vld [vmem:[%s4795_s4 + $0x6c] ss:$16 sps:$4 sm:$0xff]  }
 0x145   : > { %4827 = vst [vmem:[#allocation8_spill] sm:$0xff] %v4571_v52 }
 0x146   : > { %3556 = vtanh.f32 %v4223_v40  ;;  %1496 = vmatpush1.bf16.msra.mxu0 %v4003_v48  ;;  %1537 = vmatpush1.bf16.msra.mxu1 %v4053_v59 }
 0x147   : > { %1497 = vmatprep.subr.bf16.mxu0 %v4015_v51  ;;  %1538 = vmatprep.subr.bf16.mxu1 %v4822_v41 }
 0x14a   : > { %1498 = vmatpush1.bf16.msra.mxu0 %v4823_v44  ;;  %1539 = vmatpush1.bf16.msra.mxu1 %v4080_v35  ;;  %v3555_v48 = vpop.eup %3554  ;;  %v971_v44 = vld [vmem:[%s3718_s8 + $0x18] sm:$0xff] }
 0x14b   : > { %1499 = vmatprep.subr.bf16.mxu0 %v4824_v45  ;;  %1540 = vmatprep.subr.bf16.mxu1 %v4086_v47  ;;  %v975_v45 = vunpack.c.h.bf16 %v971_v44 }
 0x14e   : > { %1500 = vmatpush1.bf16.msra.mxu0 %v4825_v46  ;;  %1541 = vmatpush1.bf16.msra.mxu1 %v4106_v61  ;;  %v4287_v61 = vld [vmem:[%s4794_s3 + $0xcc] ss:$16 sps:$4 sm:$0xff]  }
 0x14f   : > { %1501 = vmatprep.subr.bf16.mxu0 %v4826_v49  ;;  %1542 = vmatprep.subr.bf16.mxu1 %v4112_v63  ;;  %v4292_v63 = vld [vmem:[%s4794_s3 + $0xc0] ss:$16 sps:$4 sm:$0xff]   ;;  %v974_v49 = vunpack.c.l.bf16 %v971_v44 }
 0x152   : > { %1502 = vmatpush1.bf16.msra.mxu0 %v4095_v56  ;;  %1543 = vmatpush1.bf16.msra.mxu1 %v4126_v50  ;;  %v4273_v56 = vld [vmem:[%s4794_s3 + $0xec] ss:$16 sps:$4 sm:$0xff]   ;;  %v4297_v50 = vld [vmem:[%s4794_s3 + $0xc8] ss:$16 sps:$4 sm:$0xff]  }
 0x153   : > { %v3557_v51 = vpop.eup %3556  ;;  %1503 = vmatprep.subr.bf16.mxu0 %v4101_v57  ;;  %1544 = vmatprep.subr.bf16.mxu1 %v4132_v3  ;;  %v4258_v3 = vld [vmem:[%s4794_s3 + $0xe0] ss:$16 sps:$4 sm:$0xff]   ;;  %v4282_v57 = vld [vmem:[%s4794_s3 + $0xc4] ss:$16 sps:$4 sm:$0xff]  }
 0x154   : > { %v956_v53 = vmul.f32 %v3557_v51, %v3555_v48 }
 0x156   : > { %1504 = vmatpush1.bf16.msra.mxu0 %v4120_v55  ;;  %1545 = vmatpush1.bf16.msra.mxu1 %v4140_v62  ;;  %v3158_v59 = vpack.c.bf16 %v956_v53, %v956_v53  ;;  %v964_v35 = vsel %vm963_vm9, %v956_v53, 0.0  ;;  %v4263_v55 = vld [vmem:[%s4794_s3 + $0xe4] ss:$16 sps:$4 sm:$0xff]   ;;  %v4268_v62 = vld [vmem:[%s4794_s3 + $0xe8] ss:$16 sps:$4 sm:$0xff]  }
 0x157   : > { %v966_v47 = vpack.c.bf16 %v964_v35, %v964_v35  ;;  %1811 = vmatprep.subr.bf16.mxu0 %v4263_v55  ;;  %1852 = vmatprep.subr.bf16.mxu1 %v4273_v56 }
 0x159   : > { %3159 = vmatmul.mubr.msk.bf16.vlgmr.msra.gmra.mxu0 %vm3157_vm10, %v3158_v59  ;;  %3162 = vmatmul.mubr.msk.bf16.vlgmr.msra.gmra.mxu1 %vm3157_vm10, %v3158_v59  ;;  %967 = vst [vmem:[%s3733_s19 + $0xc] sm:$0xf] %v966_v47 }
 0x15a   : > { %1843 = vmatprep.mubr.bf16.mxu0 %v4821_v58  ;;  %1884 = vmatprep.mubr.bf16.mxu1 %v4821_v58 }
 0x15b   : > { %1812 = vmatpush1.bf16.msra.mxu0 %v4258_v3  ;;  %1853 = vmatpush1.bf16.msra.mxu1 %v4268_v62 }
 0x15c   : > { %1813 = vmatprep.subr.bf16.mxu0 %v4282_v57  ;;  %1854 = vmatprep.subr.bf16.mxu1 %v4287_v61 }
 0x15f   : > { %1814 = vmatpush1.bf16.msra.mxu0 %v4292_v63  ;;  %1855 = vmatpush1.bf16.msra.mxu1 %v4297_v50 }
 0x160   : > { %1815 = vmatprep.subr.bf16.mxu0 %v4306_v7  ;;  %1856 = vmatprep.subr.bf16.mxu1 %v4311_v8 }
 0x163   : > { %1816 = vmatpush1.bf16.msra.mxu0 %v4316_v9  ;;  %1857 = vmatpush1.bf16.msra.mxu1 %v4321_v10 }
 0x164   : > { %1817 = vmatprep.subr.bf16.mxu0 %v4330_v11  ;;  %1858 = vmatprep.subr.bf16.mxu1 %v4335_v12 }
 0x167   : > { %1818 = vmatpush1.bf16.msra.mxu0 %v4340_v13  ;;  %1859 = vmatpush1.bf16.msra.mxu1 %v4345_v14 }
 0x168   : > { %1819 = vmatprep.subr.bf16.mxu0 %v4354_v15  ;;  %1860 = vmatprep.subr.bf16.mxu1 %v4359_v16 }
 0x16b   : > { %1820 = vmatpush1.bf16.msra.mxu0 %v4364_v17  ;;  %1861 = vmatpush1.bf16.msra.mxu1 %v4369_v18 }
 0x16c   : > { %1821 = vmatprep.subr.bf16.mxu0 %v4378_v19  ;;  %1862 = vmatprep.subr.bf16.mxu1 %v4383_v20 }
 0x16f   : > { %1822 = vmatpush1.bf16.msra.mxu0 %v4388_v21  ;;  %1863 = vmatpush1.bf16.msra.mxu1 %v4393_v22 }
 0x170   : > { %1823 = vmatprep.subr.bf16.mxu0 %v4402_v24  ;;  %1864 = vmatprep.subr.bf16.mxu1 %v4407_v25 }
 0x173   : > { %1824 = vmatpush1.bf16.msra.mxu0 %v4412_v26  ;;  %1865 = vmatpush1.bf16.msra.mxu1 %v4417_v27 }
 0x174   : > { %1825 = vmatprep.subr.bf16.mxu0 %v4426_v28  ;;  %1866 = vmatprep.subr.bf16.mxu1 %v4431_v29 }
 0x177   : > { %1826 = vmatpush1.bf16.msra.mxu0 %v4436_v30  ;;  %1867 = vmatpush1.bf16.msra.mxu1 %v4441_v32 }
 0x178   : > { %2131 = vmatprep.subr.bf16.mxu0 %v4450_v33  ;;  %2172 = vmatprep.subr.bf16.mxu1 %v4455_v34 }
 0x1f9   : > { %v1203_v0 = vpop.f32.mrf.mxu0  ;;  %v1244_v1 = vpop.f32.mrf.mxu1 }
 0x1fa   : > { %v1251_v2 = vadd.f32 %v1203_v0, %v972_v39  ;;  %v1253_v53 = vadd.f32 %v1244_v1, %v974_v49  ;;  %v1293_v39 = vunpack.c.l.bf16 %v1291_v38 }
 0x1fb   : > { %v1205_v4 = vpop.f32.mrf.mxu0  ;;  %v1246_v31 = vpop.f32.mrf.mxu1 }
 0x1fc   : > { %v3122_v5 = vmul.f32 -1.442695, %v1251_v2  ;;  %v1252_v6 = vadd.f32 %v1205_v4, %v973_v54  ;;  %v1254_v46 = vadd.f32 %v1246_v31, %v975_v45  ;;  %v1294_v54 = vunpack.c.h.bf16 %v1291_v38 }
 0x1fd   : > { %v1207_v36 = vpop.f32.mrf.mxu0  ;;  %v1248_v37 = vpop.f32.mrf.mxu1 }
 0x1fe   : > { %3558 = vpow2.f32 %v3122_v5  ;;  %v3123_v42 = vmul.f32 -1.442695, %v1252_v6  ;;  %v3124_v48 = vmul.f32 -1.442695, %v1254_v46 }
 0x1ff   : > { %v1208_v43 = vpop.f32.mrf.mxu0  ;;  %v1249_v41 = vpop.f32.mrf.mxu1 }
 0x200   : > { %3560 = vpow2.f32 %v3123_v42  ;;  %v1284_v43 = vpop.permute.xlu1 %1283 }
 0x201   : > { %3562 = vpow2.f32 %v3124_v48  ;;  %vm1285_vm11 = vcmp.eq.s32.totalorder %v1284_v43, 1  ;;  %v4493_v43 = vld [vmem:[%s4795_s4 + $0xcc] ss:$16 sps:$4 sm:$0xff]  }
 0x20b   : > { %v3559_v51 = vpop.eup %3558 }
 0x20c   : > { %v1258_v59 = vadd.f32 1.0, %v3559_v51 }
 0x20d   : > { %v3561_v35 = vpop.eup %3560 }
 0x20e   : > { %3564 = vrcp.f32 %v1258_v59  ;;  %v1264_v47 = vadd.f32 1.0, %v3561_v35  ;;  %v3563_v4 = vpop.eup %3562  ;;  %v1292_v35 = vld [vmem:[%s3723_s12 + $0x28] sm:$0xff] }
 0x20f   : > { %3566 = vtanh.f32 %v1253_v53  ;;  %v1271_v44 = vadd.f32 1.0, %v3563_v4  ;;  %v1296_v38 = vunpack.c.h.bf16 %v1292_v35 }
 0x210   : > { %3568 = vrcp.f32 %v1264_v47 }
 0x219   : > { %v1523_v0 = vpop.f32.mrf.mxu0  ;;  %v1564_v2 = vpop.f32.mrf.mxu1 }
 0x21a   : > { %v1571_v5 = vadd.f32 %v1523_v0, %v1293_v39  ;;  %v1295_v0 = vunpack.c.l.bf16 %v1292_v35 }
 0x21b   : > { %v3565_v6 = vpop.eup %3564  ;;  %v1525_v31 = vpop.f32.mrf.mxu0 }
 0x21c   : > { %v1566_v36 = vpop.f32.mrf.mxu1  ;;  %v3567_v37 = vpop.eup %3566  ;;  %v3163_v1 = vmul.f32 -1.442695, %v1571_v5  ;;  %v1572_v42 = vadd.f32 %v1525_v31, %v1294_v54  ;;  %v1573_v31 = vadd.f32 %v1564_v2, %v1295_v0  ;;  %v4476_v2 = vld [vmem:[%s4795_s4 + $0xe0] ss:$16 sps:$4 sm:$0xff]   ;;  %v4539_v0 = vld [vmem:[%s4795_s4 + $0x84] ss:$16 sps:$4 sm:$0xff]  }
 0x21d   : > { %v3569_v41 = vpop.eup %3568  ;;  %v1527_v45 = vpop.f32.mrf.mxu0  ;;  %v1275_v51 = vmul.f32 %v3567_v37, %v3565_v6  ;;  %v1574_v54 = vadd.f32 %v1566_v36, %v1296_v38  ;;  %v4532_v38 = vld [vmem:[%s4795_s4 + $0xa8] ss:$16 sps:$4 sm:$0xff]  }
 0x21e   : > { %v1568_v46 = vpop.f32.mrf.mxu1  ;;  %3570 = vpow2.f32 %v3163_v1  ;;  %v3164_v49 = vmul.f32 -1.442695, %v1572_v42  ;;  %v1274_v48 = vmul.f32 %v3569_v41, %v4199_v23  ;;  %v4481_v45 = vld [vmem:[%s4795_s4 + $0xe8] ss:$16 sps:$4 sm:$0xff]  }
 0x21f   : > { %v1528_v53 = vpop.f32.mrf.mxu0  ;;  %v3165_v4 = vmul.f32 -1.442695, %v1574_v54 }
 0x220   : > { %v1569_v59 = vpop.f32.mrf.mxu1  ;;  %3572 = vpow2.f32 %v3164_v49  ;;  %v1276_v47 = vadd.f32 %v1275_v51, %v1274_v48  ;;  %v4501_v48 = vld [vmem:[%s4795_s4 + $0xc0] ss:$16 sps:$4 sm:$0xff]   ;;  %v4506_v51 = vld [vmem:[%s4795_s4 + $0xc8] ss:$16 sps:$4 sm:$0xff]   ;;  %v4513_v53 = vld [vmem:[%s4795_s4 + $0xa4] ss:$16 sps:$4 sm:$0xff]  }
 0x221   : > { %3574 = vrcp.f32 %v1271_v44  ;;  %v4518_v59 = vld [vmem:[%s4795_s4 + $0xac] ss:$16 sps:$4 sm:$0xff]  }
 0x222   : > { %3576 = vtanh.f32 %v1276_v47  ;;  %v4466_v39 = vsel %vm1285_vm11, %v1276_v47, %v4199_v23  ;;  %v4527_v47 = vld [vmem:[%s4795_s4 + $0xa0] ss:$16 sps:$4 sm:$0xff]  }
 0x223   : > { %3578 = vpow2.f32 %v3165_v4  ;;  %v4544_v4 = vld [vmem:[%s4795_s4 + $0x8c] ss:$16 sps:$4 sm:$0xff]  }
 0x22b   : > { %v3571_v5 = vpop.eup %3570 }
 0x22c   : > { %v1578_v1 = vadd.f32 1.0, %v3571_v5 }
 0x22d   : > { %v3573_v6 = vpop.eup %3572 }
 0x22e   : > { %v3575_v37 = vpop.eup %3574  ;;  %3580 = vrcp.f32 %v1578_v1  ;;  %v1584_v42 = vadd.f32 1.0, %v3573_v6  ;;  %v965_v1 = vsel %vm963_vm9, %v4223_v40, 0.0  ;;  %v4566_v40 = vld [vmem:[%s4795_s4 + $0x64] ss:$16 sps:$4 sm:$0xff]  }
 0x22f   : > { %v3577_v41 = vpop.eup %3576  ;;  %3582 = vtanh.f32 %v1573_v31 }
 0x230   : > { %3584 = vrcp.f32 %v1584_v42  ;;  %v1278_v44 = vmul.f32 %v3577_v41, %v3575_v37  ;;  %v3579_v35 = vpop.eup %3578  ;;  %v4554_v41 = vld [vmem:[%s4795_s4 + $0x80] ss:$16 sps:$4 sm:$0xff]  }
 0x231   : > { %v1591_v6 = vadd.f32 1.0, %v3579_v35  ;;  %v4593_v35 = vld [vmem:[%s4795_s4 + $0x44] ss:$16 sps:$4 sm:$0xff]  }
 0x232   : > { %v4470_v23 = vsel %vm1285_vm11, %v1278_v44, %v4203_v60  ;;  %v1288_v36 = vsel %vm1285_vm11, %v1278_v44, 0.0  ;;  %v4488_v60 = vld [vmem:[%s4795_s4 + $0xc4] ss:$16 sps:$4 sm:$0xff]   ;;  %v4559_v44 = vld [vmem:[%s4795_s4 + $0x88] ss:$16 sps:$4 sm:$0xff]   ;;  %4830 = vst [vmem:[#allocation9_spill] sm:$0xff] %v4593_v35 }
 0x233   : > { %v1289_v46 = vpack.c.bf16 %v1288_v36, %v1288_v36  ;;  %v1618_v49 = vpack.c.bf16 %v4470_v23, %v4470_v23  ;;  %3586 = vrcp.f32 %v1591_v6  ;;  %v4622_v6 = vld [vmem:[%s4795_s4 + $0x2c] ss:$16 sps:$4 sm:$0xff]  }
 0x234   : > { %4835 = vst [vmem:[#allocation14_spill] sm:$0xff] %v4622_v6 }
 0x235   : > { %1290 = vst [vmem:[%s3728_s15 + $0x4] sm:$0xf] %v1289_v46  ;;  %1844 = vmatmul.mubr.bf16.vlgmr.msra.gmra.mxu0 %v1618_v49  ;;  %1885 = vmatmul.mubr.bf16.vlgmr.msra.gmra.mxu1 %v1618_v49  ;;  %v4581_v46 = vld [vmem:[%s4795_s4 + $0x60] ss:$16 sps:$4 sm:$0xff]   ;;  %v4586_v49 = vld [vmem:[%s4795_s4 + $0x68] ss:$16 sps:$4 sm:$0xff]  }
 0x236   : > { %2132 = vmatpush1.bf16.msra.mxu0 %v4476_v2  ;;  %2173 = vmatpush1.bf16.msra.mxu1 %v4481_v45  ;;  %4828 = vst [vmem:[#allocation6_spill] sm:$0xff] %v4581_v46  ;;  %4829 = vst [vmem:[#allocation7_spill] sm:$0xff] %v4586_v49 }
 0x237   : > { %2133 = vmatprep.subr.bf16.mxu0 %v4488_v60  ;;  %2174 = vmatprep.subr.bf16.mxu1 %v4493_v43 }
 0x238   : > { %2163 = vmatprep.mubr.bf16.mxu0 %v4821_v58  ;;  %2204 = vmatprep.mubr.bf16.mxu1 %v4821_v58 }
 0x23a   : > { %2134 = vmatpush1.bf16.msra.mxu0 %v4501_v48  ;;  %2175 = vmatpush1.bf16.msra.mxu1 %v4506_v51 }
 0x23b   : > { %v3581_v54 = vpop.eup %3580  ;;  %2135 = vmatprep.subr.bf16.mxu0 %v4513_v53  ;;  %2176 = vmatprep.subr.bf16.mxu1 %v4518_v59 }
 0x23c   : > { %v3583_v5 = vpop.eup %3582 }
 0x23d   : > { %v3585_v31 = vpop.eup %3584  ;;  %v1595_v42 = vmul.f32 %v3583_v5, %v3581_v54  ;;  %v4598_v54 = vld [vmem:[%s4795_s4 + $0x4c] ss:$16 sps:$4 sm:$0xff]   ;;  %v4605_v5 = vld [vmem:[%s4795_s4 + $0x40] ss:$16 sps:$4 sm:$0xff]  }
 0x23e   : > { %v1594_v37 = vmul.f32 %v3585_v31, %v965_v1  ;;  %2136 = vmatpush1.bf16.msra.mxu0 %v4527_v47  ;;  %2177 = vmatpush1.bf16.msra.mxu1 %v4532_v38  ;;  %4831 = vst [vmem:[#allocation10_spill] sm:$0xff] %v4598_v54  ;;  %4832 = vst [vmem:[#allocation11_spill] sm:$0xff] %v4605_v5  ;;  %v4610_v31 = vld [vmem:[%s4795_s4 + $0x48] ss:$16 sps:$4 sm:$0xff]   ;;  %v4617_v1 = vld [vmem:[%s4795_s4 + $0x24] ss:$16 sps:$4 sm:$0xff]  }
 0x23f   : > { %2137 = vmatprep.subr.bf16.mxu0 %v4539_v0  ;;  %2178 = vmatprep.subr.bf16.mxu1 %v4544_v4  ;;  %4833 = vst [vmem:[#allocation12_spill] sm:$0xff] %v4610_v31  ;;  %4834 = vst [vmem:[#allocation13_spill] sm:$0xff] %v4617_v1 }
 0x240   : > { %v4573_v36 = vadd.f32 %v1595_v42, %v1594_v37  ;;  %v4629_v37 = vld [vmem:[%s4795_s4 + $0x20] ss:$16 sps:$4 sm:$0xff]   ;;  %v4634_v42 = vld [vmem:[%s4795_s4 + $0x28] ss:$16 sps:$4 sm:$0xff]  }
 0x241   : > { %4836 = vst [vmem:[#allocation15_spill] sm:$0xff] %v4629_v37  ;;  %4837 = vst [vmem:[#allocation16_spill] sm:$0xff] %v4634_v42 }
 0x242   : > { %3588 = vtanh.f32 %v4573_v36  ;;  %2138 = vmatpush1.bf16.msra.mxu0 %v4554_v41  ;;  %2179 = vmatpush1.bf16.msra.mxu1 %v4559_v44 }
 0x243   : > { %2139 = vmatprep.subr.bf16.mxu0 %v4566_v40  ;;  %2180 = vmatprep.subr.bf16.mxu1 %v4571_v52 }
 0x246   : > { %2140 = vmatpush1.bf16.msra.mxu0 %v4581_v46  ;;  %2181 = vmatpush1.bf16.msra.mxu1 %v4586_v49  ;;  %v4662_v49 = vpop.permute.xlu1 %1603 }
 0x247   : > { %2141 = vmatprep.subr.bf16.mxu0 %v4593_v35  ;;  %2182 = vmatprep.subr.bf16.mxu1 %v4598_v54  ;;  %v3587_v54 = vpop.eup %3586  ;;  %vm1605_vm12 = vcmp.eq.s32.totalorder %v4662_v49, 1 }
 0x248   : > { %vm3233_vm13 = vmpackc.low %vm1605_vm12, %vm1605_vm12 }
 0x24a   : > { %2142 = vmatpush1.bf16.msra.mxu0 %v4605_v5  ;;  %2183 = vmatpush1.bf16.msra.mxu1 %v4610_v31  ;;  %v4641_v5 = vld [vmem:[%s4795_s4 + $0x4] ss:$16 sps:$4 sm:$0xff]   ;;  %v4646_v31 = vld [vmem:[%s4795_s4 + $0xc] ss:$16 sps:$4 sm:$0xff]  }
 0x24b   : > { %2143 = vmatprep.subr.bf16.mxu0 %v4617_v1  ;;  %2184 = vmatprep.subr.bf16.mxu1 %v4622_v6  ;;  %v4653_v1 = vld [vmem:[%s4795_s4] ss:$16 sps:$4 sm:$0xff]   ;;  %v4658_v6 = vld [vmem:[%s4795_s4 + $0x8] ss:$16 sps:$4 sm:$0xff]  }
 0x24e   : > { %2144 = vmatpush1.bf16.msra.mxu0 %v4629_v37  ;;  %2185 = vmatpush1.bf16.msra.mxu1 %v4634_v42 }
 0x24f   : > { %v3589_v35 = vpop.eup %3588  ;;  %2145 = vmatprep.subr.bf16.mxu0 %v4641_v5  ;;  %2186 = vmatprep.subr.bf16.mxu1 %v4646_v31 }
 0x250   : > { %v1598_v37 = vmul.f32 %v3589_v35, %v3587_v54 }
 0x252   : > { %v1606_v42 = vsel %vm1605_vm12, %v1598_v37, 0.0  ;;  %v3234_v46 = vpack.c.bf16 %v1598_v37, %v1598_v37  ;;  %2146 = vmatpush1.bf16.msra.mxu0 %v4653_v1  ;;  %2187 = vmatpush1.bf16.msra.mxu1 %v4658_v6 }
 0x253   : > { %v1608_v52 = vpack.c.bf16 %v1606_v42, %v1606_v42  ;;  %2452 = vmatprep.subr.bf16.mxu0 %v4263_v55  ;;  %2493 = vmatprep.subr.bf16.mxu1 %v4273_v56 }
 0x255   : > { %1609 = vst [vmem:[%s3733_s19 + $0x8] sm:$0xf] %v1608_v52  ;;  %3235 = vmatmul.mubr.msk.bf16.vlgmr.msra.gmra.mxu0 %vm3233_vm13, %v3234_v46  ;;  %3238 = vmatmul.mubr.msk.bf16.vlgmr.msra.gmra.mxu1 %vm3233_vm13, %v3234_v46 }
 0x256   : > { %2453 = vmatpush1.bf16.msra.mxu0 %v4258_v3  ;;  %2494 = vmatpush1.bf16.msra.mxu1 %v4268_v62  ;;  %v1612_v3 = vld [vmem:[%s3718_s8 + $0x20] sm:$0xff] }
 0x257   : > { %2454 = vmatprep.subr.bf16.mxu0 %v4282_v57  ;;  %2495 = vmatprep.subr.bf16.mxu1 %v4287_v61  ;;  %v1614_v55 = vunpack.c.l.bf16 %v1612_v3  ;;  %v1615_v62 = vunpack.c.h.bf16 %v1612_v3 }
 0x258   : > { %2484 = vmatprep.mubr.bf16.mxu0 %v4821_v58  ;;  %2525 = vmatprep.mubr.bf16.mxu1 %v4821_v58 }
 0x25a   : > { %2455 = vmatpush1.bf16.msra.mxu0 %v4292_v63  ;;  %2496 = vmatpush1.bf16.msra.mxu1 %v4297_v50 }
 0x25b   : > { %2456 = vmatprep.subr.bf16.mxu0 %v4306_v7  ;;  %2497 = vmatprep.subr.bf16.mxu1 %v4311_v8 }
 0x25e   : > { %2457 = vmatpush1.bf16.msra.mxu0 %v4316_v9  ;;  %2498 = vmatpush1.bf16.msra.mxu1 %v4321_v10 }
 0x25f   : > { %2458 = vmatprep.subr.bf16.mxu0 %v4330_v11  ;;  %2499 = vmatprep.subr.bf16.mxu1 %v4335_v12 }
 0x262   : > { %2459 = vmatpush1.bf16.msra.mxu0 %v4340_v13  ;;  %2500 = vmatpush1.bf16.msra.mxu1 %v4345_v14  ;;  %v1613_v14 = vld [vmem:[%s3718_s8 + $0x28] sm:$0xff] }
 0x263   : > { %2460 = vmatprep.subr.bf16.mxu0 %v4354_v15  ;;  %2501 = vmatprep.subr.bf16.mxu1 %v4359_v16  ;;  %v1617_v15 = vunpack.c.h.bf16 %v1613_v14 }
 0x266   : > { %2461 = vmatpush1.bf16.msra.mxu0 %v4364_v17  ;;  %2502 = vmatpush1.bf16.msra.mxu1 %v4369_v18  ;;  %v1616_v17 = vunpack.c.l.bf16 %v1613_v14 }
 0x267   : > { %2462 = vmatprep.subr.bf16.mxu0 %v4378_v19  ;;  %2503 = vmatprep.subr.bf16.mxu1 %v4383_v20 }
 0x26a   : > { %2463 = vmatpush1.bf16.msra.mxu0 %v4388_v21  ;;  %2504 = vmatpush1.bf16.msra.mxu1 %v4393_v22 }
 0x26b   : > { %2464 = vmatprep.subr.bf16.mxu0 %v4402_v24  ;;  %2505 = vmatprep.subr.bf16.mxu1 %v4407_v25  ;;  %v1933_v25 = vld [vmem:[%s3723_s12 + $0x10] sm:$0xff] }
 0x26e   : > { %2465 = vmatpush1.bf16.msra.mxu0 %v4412_v26  ;;  %2506 = vmatpush1.bf16.msra.mxu1 %v4417_v27  ;;  %v1935_v26 = vunpack.c.l.bf16 %v1933_v25  ;;  %v1936_v27 = vunpack.c.h.bf16 %v1933_v25 }
 0x26f   : > { %2466 = vmatprep.subr.bf16.mxu0 %v4426_v28  ;;  %2507 = vmatprep.subr.bf16.mxu1 %v4431_v29 }
 0x272   : > { %2467 = vmatpush1.bf16.msra.mxu0 %v4436_v30  ;;  %2508 = vmatpush1.bf16.msra.mxu1 %v4441_v32 }
 0x273   : > { %2772 = vmatprep.subr.bf16.mxu0 %v4450_v33  ;;  %2813 = vmatprep.subr.bf16.mxu1 %v4455_v34 }
 0x2f5   : > { %v1845_v56 = vpop.f32.mrf.mxu0  ;;  %v1886_v57 = vpop.f32.mrf.mxu1 }
 0x2f6   : > { %v1893_v61 = vadd.f32 %v1845_v56, %v1614_v55  ;;  %v1895_v20 = vadd.f32 %v1886_v57, %v1616_v17 }
 0x2f7   : > { %v1847_v63 = vpop.f32.mrf.mxu0  ;;  %v1888_v50 = vpop.f32.mrf.mxu1 }
 0x2f8   : > { %v3198_v7 = vmul.f32 -1.442695, %v1893_v61  ;;  %v1894_v8 = vadd.f32 %v1847_v63, %v1615_v62  ;;  %v1896_v16 = vadd.f32 %v1888_v50, %v1617_v15  ;;  %v1926_v50 = vpop.permute.xlu0 %1925 }
 0x2f9   : > { %v1849_v9 = vpop.f32.mrf.mxu0  ;;  %v1890_v10 = vpop.f32.mrf.mxu1  ;;  %vm1927_vm14 = vcmp.eq.s32.totalorder %v1926_v50, 1 }
 0x2fa   : > { %3590 = vpow2.f32 %v3198_v7  ;;  %v3199_v11 = vmul.f32 -1.442695, %v1894_v8  ;;  %v3200_v18 = vmul.f32 -1.442695, %v1896_v16  ;;  %v1934_v8 = vld [vmem:[%s3723_s12 + $0x18] sm:$0xff] }
 0x2fb   : > { %v1850_v12 = vpop.f32.mrf.mxu0  ;;  %v1891_v13 = vpop.f32.mrf.mxu1  ;;  %v1938_v9 = vunpack.c.h.bf16 %v1934_v8 }
 0x2fc   : > { %3592 = vpow2.f32 %v3199_v11  ;;  %v1937_v12 = vunpack.c.l.bf16 %v1934_v8 }
 0x2fd   : > { %3594 = vpow2.f32 %v3200_v18 }
 0x307   : > { %v3591_v19 = vpop.eup %3590 }
 0x308   : > { %v1900_v21 = vadd.f32 1.0, %v3591_v19 }
 0x309   : > { %v3593_v22 = vpop.eup %3592 }
 0x30a   : > { %3596 = vrcp.f32 %v1900_v21  ;;  %v1906_v24 = vadd.f32 1.0, %v3593_v22  ;;  %v3595_v30 = vpop.eup %3594 }
 0x30b   : > { %3598 = vtanh.f32 %v1895_v20  ;;  %v1913_v42 = vadd.f32 1.0, %v3595_v30 }
 0x30c   : > { %3600 = vrcp.f32 %v1906_v24 }
 0x315   : > { %v2165_v28 = vpop.f32.mrf.mxu0  ;;  %v2206_v29 = vpop.f32.mrf.mxu1 }
 0x316   : > { %v2213_v32 = vadd.f32 %v2165_v28, %v1935_v26  ;;  %v2215_v15 = vadd.f32 %v2206_v29, %v1937_v12  ;;  %v4762_v29 = vpop.permute.xlu1 %2245 }
 0x317   : > { %v3597_v33 = vpop.eup %3596  ;;  %v2167_v34 = vpop.f32.mrf.mxu0  ;;  %vm2247_vm15 = vcmp.eq.s32.totalorder %v4762_v29, 1 }
 0x318   : > { %v2208_v52 = vpop.f32.mrf.mxu1  ;;  %v3599_v46 = vpop.eup %3598  ;;  %v3239_v35 = vmul.f32 -1.442695, %v2213_v32  ;;  %v2214_v54 = vadd.f32 %v2167_v34, %v1936_v27  ;;  %vm3309_vm0 = vmpackc.low %vm2247_vm15, %vm2247_vm15 }
 0x319   : > { %v3601_v37 = vpop.eup %3600  ;;  %v2169_v3 = vpop.f32.mrf.mxu0  ;;  %v1917_v62 = vmul.f32 %v3599_v46, %v3597_v33  ;;  %v2216_v11 = vadd.f32 %v2208_v52, %v1938_v9 }
 0x31a   : > { %v2210_v55 = vpop.f32.mrf.mxu1  ;;  %v1916_v56 = vmul.f32 %v3601_v37, %v4466_v39  ;;  %3602 = vpow2.f32 %v3239_v35  ;;  %v3240_v57 = vmul.f32 -1.442695, %v2214_v54 }
 0x31b   : > { %v2170_v61 = vpop.f32.mrf.mxu0  ;;  %v3241_v13 = vmul.f32 -1.442695, %v2216_v11 }
 0x31c   : > { %v2211_v63 = vpop.f32.mrf.mxu1  ;;  %v1918_v7 = vadd.f32 %v1917_v62, %v1916_v56  ;;  %3604 = vpow2.f32 %v3240_v57  ;;  %v2254_v61 = vld [vmem:[%s3718_s8 + $0x38] sm:$0xff] }
 0x31d   : > { %3606 = vrcp.f32 %v1913_v42  ;;  %v2258_v63 = vunpack.c.h.bf16 %v2254_v61 }
 0x31e   : > { %3608 = vtanh.f32 %v1918_v7  ;;  %v4716_v10 = vsel %vm1927_vm14, %v1918_v7, %v4466_v39  ;;  %v2257_v7 = vunpack.c.l.bf16 %v2254_v61 }
 0x31f   : > { %3610 = vpow2.f32 %v3241_v13 }
 0x327   : > { %v3603_v14 = vpop.eup %3602 }
 0x328   : > { %v2220_v16 = vadd.f32 1.0, %v3603_v14 }
 0x329   : > { %v3605_v17 = vpop.eup %3604 }
 0x32a   : > { %v3607_v18 = vpop.eup %3606  ;;  %3612 = vrcp.f32 %v2220_v16  ;;  %v2226_v19 = vadd.f32 1.0, %v3605_v17 }
 0x32b   : > { %v3609_v20 = vpop.eup %3608  ;;  %3614 = vtanh.f32 %v2215_v15  ;;  %v2574_v15 = vld [vmem:[%s3723_s12] sm:$0xff] }
 0x32c   : > { %3616 = vrcp.f32 %v2226_v19  ;;  %v1920_v21 = vmul.f32 %v3609_v20, %v3607_v18  ;;  %v2576_v16 = vunpack.c.l.bf16 %v2574_v15  ;;  %v2577_v17 = vunpack.c.h.bf16 %v2574_v15 }
 0x32e   : > { %v4720_v39 = vsel %vm1927_vm14, %v1920_v21, %v4470_v23  ;;  %v1930_v22 = vsel %vm1927_vm14, %v1920_v21, 0.0  ;;  %v3611_v23 = vpop.eup %3610 }
 0x32f   : > { %v1931_v24 = vpack.c.bf16 %v1930_v22, %v1930_v22  ;;  %v2259_v25 = vpack.c.bf16 %v4720_v39, %v4720_v39 }
 0x331   : > { %1932 = vst [vmem:[%s3728_s15 + $0x8] sm:$0xf] %v1931_v24  ;;  %2485 = vmatmul.mubr.bf16.vlgmr.msra.gmra.mxu0 %v2259_v25  ;;  %2526 = vmatmul.mubr.bf16.vlgmr.msra.gmra.mxu1 %v2259_v25 }
 0x332   : > { %2773 = vmatpush1.bf16.msra.mxu0 %v4476_v2  ;;  %2814 = vmatpush1.bf16.msra.mxu1 %v4481_v45 }
 0x333   : > { %2774 = vmatprep.subr.bf16.mxu0 %v4488_v60  ;;  %2815 = vmatprep.subr.bf16.mxu1 %v4493_v43  ;;  %v1607_v60 = vsel %vm1605_vm12, %v4573_v36, 0.0  ;;  %v2233_v43 = vadd.f32 1.0, %v3611_v23  ;;  %v4848_v36 = vld [vmem:[#allocation16_spill] sm:$0xff] }
 0x334   : > { %2804 = vmatprep.mubr.bf16.mxu0 %v4821_v58  ;;  %2845 = vmatprep.mubr.bf16.mxu1 %v4821_v58 }
 0x335   : > { %3618 = vrcp.f32 %v2233_v43 }
 0x336   : > { %2775 = vmatpush1.bf16.msra.mxu0 %v4501_v48  ;;  %2816 = vmatpush1.bf16.msra.mxu1 %v4506_v51  ;;  %v4838_v48 = vld [vmem:[#allocation8_spill] sm:$0xff]  ;;  %v4839_v51 = vld [vmem:[#allocation6_spill] sm:$0xff] }
 0x337   : > { %v3613_v26 = vpop.eup %3612  ;;  %2776 = vmatprep.subr.bf16.mxu0 %v4513_v53  ;;  %2817 = vmatprep.subr.bf16.mxu1 %v4518_v59  ;;  %v4840_v53 = vld [vmem:[#allocation7_spill] sm:$0xff]  ;;  %v4841_v59 = vld [vmem:[#allocation9_spill] sm:$0xff] }
 0x338   : > { %v3615_v2 = vpop.eup %3614 }
 0x339   : > { %v3617_v45 = vpop.eup %3616  ;;  %v2237_v27 = vmul.f32 %v3615_v2, %v3613_v26 }
 0x33a   : > { %v2236_v28 = vmul.f32 %v3617_v45, %v1607_v60  ;;  %2777 = vmatpush1.bf16.msra.mxu0 %v4527_v47  ;;  %2818 = vmatpush1.bf16.msra.mxu1 %v4532_v38  ;;  %v4842_v47 = vld [vmem:[#allocation10_spill] sm:$0xff]  ;;  %v4843_v38 = vld [vmem:[#allocation11_spill] sm:$0xff] }
 0x33b   : > { %2778 = vmatprep.subr.bf16.mxu0 %v4539_v0  ;;  %2819 = vmatprep.subr.bf16.mxu1 %v4544_v4  ;;  %v4844_v0 = vld [vmem:[#allocation12_spill] sm:$0xff]  ;;  %v4845_v4 = vld [vmem:[#allocation13_spill] sm:$0xff] }
 0x33c   : > { %v4743_v58 = vadd.f32 %v2237_v27, %v2236_v28  ;;  %v2567_v28 = vpop.permute.xlu0 %2566 }
 0x33d   : > { %vm2568_vm1 = vcmp.eq.s32.totalorder %v2567_v28, 1 }
 0x33e   : > { %3620 = vtanh.f32 %v4743_v58  ;;  %2779 = vmatpush1.bf16.msra.mxu0 %v4554_v41  ;;  %2820 = vmatpush1.bf16.msra.mxu1 %v4559_v44  ;;  %v4846_v41 = vld [vmem:[#allocation14_spill] sm:$0xff] }
 0x33f   : > { %2780 = vmatprep.subr.bf16.mxu0 %v4566_v40  ;;  %2821 = vmatprep.subr.bf16.mxu1 %v4838_v48  ;;  %v4847_v40 = vld [vmem:[#allocation15_spill] sm:$0xff] }
 0x342   : > { %2781 = vmatpush1.bf16.msra.mxu0 %v4839_v51  ;;  %2822 = vmatpush1.bf16.msra.mxu1 %v4840_v53  ;;  %v3619_v44 = vpop.eup %3618 }
 0x343   : > { %2782 = vmatprep.subr.bf16.mxu0 %v4841_v59  ;;  %2823 = vmatprep.subr.bf16.mxu1 %v4842_v47 }
 0x346   : > { %2783 = vmatpush1.bf16.msra.mxu0 %v4843_v38  ;;  %2824 = vmatpush1.bf16.msra.mxu1 %v4844_v0  ;;  %v2575_v0 = vld [vmem:[%s3723_s12 + $0x8] sm:$0xff] }
 0x347   : > { %2784 = vmatprep.subr.bf16.mxu0 %v4845_v4  ;;  %2825 = vmatprep.subr.bf16.mxu1 %v4846_v41  ;;  %v2579_v4 = vunpack.c.h.bf16 %v2575_v0 }
 0x34a   : > { %2785 = vmatpush1.bf16.msra.mxu0 %v4847_v40  ;;  %2826 = vmatpush1.bf16.msra.mxu1 %v4848_v36  ;;  %v2578_v40 = vunpack.c.l.bf16 %v2575_v0 }
 0x34b   : > { %v3621_v49 = vpop.eup %3620  ;;  %2786 = vmatprep.subr.bf16.mxu0 %v4641_v5  ;;  %2827 = vmatprep.subr.bf16.mxu1 %v4646_v31  ;;  %v2253_v5 = vld [vmem:[%s3718_s8 + $0x30] sm:$0xff] }
 0x34c   : > { %v2240_v30 = vmul.f32 %v3621_v49, %v3619_v44  ;;  %v2255_v31 = vunpack.c.l.bf16 %v2253_v5  ;;  %v2256_v52 = vunpack.c.h.bf16 %v2253_v5 }
 0x34e   : > { %2787 = vmatpush1.bf16.msra.mxu0 %v4653_v1  ;;  %2828 = vmatpush1.bf16.msra.mxu1 %v4658_v6  ;;  %v2248_v32 = vsel %vm2247_vm15, %v2240_v30, 0.0  ;;  %v3310_v33 = vpack.c.bf16 %v2240_v30, %v2240_v30 }
 0x34f   : > { %v2250_v34 = vpack.c.bf16 %v2248_v32, %v2248_v32 }
 0x351   : > { %2251 = vst [vmem:[%s3733_s19 + $0x4] sm:$0xf] %v2250_v34  ;;  %3311 = vmatmul.mubr.msk.bf16.vlgmr.msra.gmra.mxu0 %vm3309_vm0, %v3310_v33  ;;  %3314 = vmatmul.mubr.msk.bf16.vlgmr.msra.gmra.mxu1 %vm3309_vm0, %v3310_v33 }
 0x3f1   : > { %v2486_v46 = vpop.f32.mrf.mxu0  ;;  %v2527_v1 = vpop.f32.mrf.mxu1 }
 0x3f2   : > { %v2534_v35 = vadd.f32 %v2486_v46, %v2255_v31  ;;  %v2536_v11 = vadd.f32 %v2527_v1, %v2257_v7 }
 0x3f3   : > { %v2488_v6 = vpop.f32.mrf.mxu0  ;;  %v2529_v54 = vpop.f32.mrf.mxu1 }
 0x3f4   : > { %v3274_v37 = vmul.f32 -1.442695, %v2534_v35  ;;  %v2535_v42 = vadd.f32 %v2488_v6, %v2256_v52  ;;  %v2537_v50 = vadd.f32 %v2529_v54, %v2258_v63 }
 0x3f5   : > { %v2490_v3 = vpop.f32.mrf.mxu0  ;;  %v2531_v55 = vpop.f32.mrf.mxu1 }
 0x3f6   : > { %3622 = vpow2.f32 %v3274_v37  ;;  %v3275_v62 = vmul.f32 -1.442695, %v2535_v42  ;;  %v3276_v8 = vmul.f32 -1.442695, %v2537_v50  ;;  %v2249_v42 = vsel %vm2247_vm15, %v4743_v58, 0.0  ;;  %v2887_v55 = vpop.permute.xlu1 %2886 }
 0x3f7   : > { %v2491_v56 = vpop.f32.mrf.mxu0  ;;  %v2532_v57 = vpop.f32.mrf.mxu1  ;;  %vm2888_vm2 = vcmp.eq.s32.totalorder %v2887_v55, 1 }
 0x3f8   : > { %3624 = vpow2.f32 %v3275_v62 }
 0x3f9   : > { %3626 = vpow2.f32 %v3276_v8 }
 0x403   : > { %v3623_v9 = vpop.eup %3622 }
 0x404   : > { %v2541_v12 = vadd.f32 1.0, %v3623_v9 }
 0x405   : > { %v3625_v13 = vpop.eup %3624 }
 0x406   : > { %3628 = vrcp.f32 %v2541_v12  ;;  %v2547_v14 = vadd.f32 1.0, %v3625_v13  ;;  %v3627_v20 = vpop.eup %3626 }
 0x407   : > { %3630 = vtanh.f32 %v2536_v11  ;;  %v2554_v60 = vadd.f32 1.0, %v3627_v20 }
 0x408   : > { %3632 = vrcp.f32 %v2547_v14 }
 0x411   : > { %v2806_v18 = vpop.f32.mrf.mxu0  ;;  %v2847_v19 = vpop.f32.mrf.mxu1 }
 0x412   : > { %v2854_v21 = vadd.f32 %v2806_v18, %v2576_v16  ;;  %v2856_v30 = vadd.f32 %v2847_v19, %v2578_v40 }
 0x413   : > { %v3629_v22 = vpop.eup %3628  ;;  %v2808_v24 = vpop.f32.mrf.mxu0 }
 0x414   : > { %v2849_v25 = vpop.f32.mrf.mxu1  ;;  %v3631_v23 = vpop.eup %3630  ;;  %v3315_v26 = vmul.f32 -1.442695, %v2854_v21  ;;  %v2855_v2 = vadd.f32 %v2808_v24, %v2577_v17 }
 0x415   : > { %v3633_v45 = vpop.eup %3632  ;;  %v2810_v43 = vpop.f32.mrf.mxu0  ;;  %v2558_v48 = vmul.f32 %v3631_v23, %v3629_v22  ;;  %v2857_v44 = vadd.f32 %v2849_v25, %v2579_v4 }
 0x416   : > { %v2851_v27 = vpop.f32.mrf.mxu1  ;;  %v2557_v51 = vmul.f32 %v3633_v45, %v4716_v10  ;;  %3634 = vpow2.f32 %v3315_v26  ;;  %v3316_v53 = vmul.f32 -1.442695, %v2855_v2 }
 0x417   : > { %v2811_v59 = vpop.f32.mrf.mxu0  ;;  %v3317_v36 = vmul.f32 -1.442695, %v2857_v44 }
 0x418   : > { %v2852_v47 = vpop.f32.mrf.mxu1  ;;  %v2559_v38 = vadd.f32 %v2558_v48, %v2557_v51  ;;  %3636 = vpow2.f32 %v3316_v53 }
 0x419   : > { %3638 = vrcp.f32 %v2554_v60 }
 0x41a   : > { %3640 = vtanh.f32 %v2559_v38  ;;  %v2570_v41 = vsel %vm2568_vm1, %v2559_v38, %v4716_v10 }
 0x41b   : > { %2894 = vst [vmem:[#allocation3] sm:$0xff] %v2570_v41  ;;  %3642 = vpow2.f32 %v3317_v36 }
 0x423   : > { %v3635_v49 = vpop.eup %3634 }
 0x424   : > { %v2861_v32 = vadd.f32 1.0, %v3635_v49 }
 0x425   : > { %v3637_v33 = vpop.eup %3636 }
 0x426   : > { %v3639_v34 = vpop.eup %3638  ;;  %3644 = vrcp.f32 %v2861_v32  ;;  %v2867_v5 = vadd.f32 1.0, %v3637_v33 }
 0x427   : > { %v3641_v31 = vpop.eup %3640  ;;  %3646 = vtanh.f32 %v2856_v30 }
 0x428   : > { %v2561_v52 = vmul.f32 %v3641_v31, %v3639_v34  ;;  %3648 = vrcp.f32 %v2867_v5  ;;  %v3643_v35 = vpop.eup %3642 }
 0x429   : > { %v2874_v3 = vadd.f32 1.0, %v3643_v35 }
 0x42a   : > { %v2569_v10 = vsel %vm2568_vm1, %v2561_v52, %v4720_v39  ;;  %v2571_v46 = vsel %vm2568_vm1, %v2561_v52, 0.0 }
 0x42b   : > { %v2572_v1 = vpack.c.bf16 %v2571_v46, %v2571_v46  ;;  %2893 = vst [vmem:[#allocation2] sm:$0xff] %v2569_v10  ;;  %3650 = vrcp.f32 %v2874_v3 }
 0x42d   : > { %2573 = vst [vmem:[%s3728_s15 + $0xc] sm:$0xf] %v2572_v1 }
 0x433   : > { %v3645_v6 = vpop.eup %3644 }
 0x434   : > { %v3647_v54 = vpop.eup %3646 }
 0x435   : > { %v3649_v37 = vpop.eup %3648  ;;  %v2878_v62 = vmul.f32 %v3647_v54, %v3645_v6 }
 0x436   : > { %v2877_v56 = vmul.f32 %v3649_v37, %v2249_v42 }
 0x438   : > { %v2879_v57 = vadd.f32 %v2878_v62, %v2877_v56  ;;  %v3651_v61 = vpop.eup %3650 }
 0x43a   : > { %3652 = vtanh.f32 %v2879_v57  ;;  %v2890_v39 = vsel %vm2888_vm2, %v2879_v57, 0.0 }
 0x43b   : > { %2896 = vst [vmem:[#allocation5] sm:$0xff] %v2890_v39 }
 0x447   : > { %v3653_v63 = vpop.eup %3652 }
 0x448   : > { %v2881_v50 = vmul.f32 %v3653_v63, %v3651_v61 }
 0x44a   : > { %v2889_v7 = vsel %vm2888_vm2, %v2881_v50, 0.0 }
 0x44b   : > { %v2891_v8 = vpack.c.bf16 %v2889_v7, %v2889_v7  ;;  %2895 = vst [vmem:[#allocation4] sm:$0xff] %v2889_v7 }
 0x44d   : > { %2892 = vst [vmem:[%s3733_s19] sm:$0xf] %v2891_v8 }
 0x44e PF: > { %s17_s21 = sadd.s32 1, %s3660_s21  }
 0x44f   : > { %p14_p6 = scmp.ge.s32.totalorder %s17_s21, 4  }
 0x451   :  { %16 = sbr.rel (!%p14_p6) target bundleno = 1 (0x1), region = 89 }

</bundles_post_ra>
